<compile_context>
chip_gen: v6e
topology: v6e:2x2x1
jax: 0.10.0
libtpu: 0.0.40
codegen_flags: <defaults>
</compile_context>

<pallas_src>
import functools
import math

import jax
import jax.numpy as jnp
from jax.experimental import pallas as pl
from jax.experimental.pallas import tpu as pltpu  # noqa: F401 (TPU backend assumed)

# ---- model config (small shapes consistent with GPTModel.__init__) ----------
TRG_PAD_IDX = 1
DEC_VOC_SIZE = 64
MAX_LEN = 32
D_MODEL = 32
N_HEADS = 4
FFN_HIDDEN = 64
N_LAYERS = 2
LN_EPS = 1e-12  # the reference custom LayerNorm uses eps=1e-12, biased variance
VOC_PAD = ((DEC_VOC_SIZE + 127) // 128) * 128   # lane-dense LM-head width (128)


# ----------------------------- fused Pallas kernel ---------------------------
def gpt_fused_kernel(x_ref, mask_ref,
                     wqkv_ref, bqkv_ref, wo_ref, bo_ref,
                     g1_ref, be1_ref, w1_ref, b1_ref, w2_ref, b2_ref,
                     g2_ref, be2_ref, lmw_ref, lmb_ref,
                     o_ref, *, n_heads, batch):
    """Entire GPT forward for the whole batch in one invocation.

    x_ref:    (B*S, D)            flattened embeddings
    mask_ref: (H*B, S, S) float   1.0 = attend, 0.0 = masked (n = h*B + b)
    *_ref:    per-layer params stacked on a leading layer axis [L, ...]
    lmw_ref:  (D, VOC_PAD), lmb_ref: (1, VOC_PAD)  zero-padded vocab projection
    o_ref:    (B, S, VOC_PAD)
    """
    x = x_ref[...]                              # [B*S, D] f32
    BS, D = x.shape
    H = n_heads
    B = batch
    S = BS // B
    dh = D // H
    L = wqkv_ref.shape[0]
    scale = 1.0 / math.sqrt(dh)

    # Boolean attend mask, replicated per head; hoisted once for all layers.
    attend = mask_ref[...] > 0.0                # [H*B, S, S] bool

    for l in range(L):                          # static (unrolled) layer loop
        # ---- fused QKV projection: single [B*S, D] x [D, 3D] matmul ----
        qkv = jnp.dot(x, wqkv_ref[l],
                      preferred_element_type=jnp.float32) + bqkv_ref[l]
        q2 = qkv[:, :D]
        k2 = qkv[:, D:2 * D]
        v2 = qkv[:, 2 * D:]

        # Stack heads into the leading batch axis -> [H*B, S, dh] (n = h*B + b)
        def to_heads(t2):
            return jnp.concatenate(
                [t2[:, h * dh:(h + 1) * dh].reshape(B, S, dh) for h in range(H)],
                axis=0)
        qn = to_heads(q2)
        kn = to_heads(k2)
        vn = to_heads(v2)

        # ---- scaled dot-product attention, all heads/batches at once ----
        s = jnp.einsum('nqd,nkd->nqk', qn, kn,
                       preferred_element_type=jnp.float32) * scale
        s = jnp.where(attend, s, -10000.0)      # masked_fill(mask == 0, -1e4)
        s = s - jnp.max(s, axis=-1, keepdims=True)
        p = jnp.exp(s)
        p = p * pl.reciprocal(jnp.sum(p, axis=-1, keepdims=True), approx=True)
        ctx = jnp.einsum('nqk,nkd->nqd', p, vn,
                         preferred_element_type=jnp.float32)   # [H*B, S, dh]

        # ---- output projection: concat_h(ctx_h) @ Wo == sum_h ctx_h @ Wo_h ----
        wo = wo_ref[l]
        parts = []
        for h in range(H):
            ctx_h = ctx[h * B:(h + 1) * B].reshape(BS, dh)      # [B*S, dh]
            parts.append(jnp.dot(ctx_h, wo[h * dh:(h + 1) * dh, :],
                                 preferred_element_type=jnp.float32))
        attn = sum(parts) + bo_ref[l]

        # ---- residual + LayerNorm 1 (dropout = identity) ----
        y = x + attn
        mu = jnp.mean(y, axis=-1, keepdims=True)
        var = jnp.mean((y - mu) ** 2, axis=-1, keepdims=True)
        y = (y - mu) * jax.lax.rsqrt(var + LN_EPS) * g1_ref[l] + be1_ref[l]

        # ---- position-wise FFN: Linear -> ReLU -> Linear (dropout = identity)
        h1 = jnp.maximum(
            jnp.dot(y, w1_ref[l], preferred_element_type=jnp.float32) + b1_ref[l],
            0.0)
        h2 = jnp.dot(h1, w2_ref[l], preferred_element_type=jnp.float32) + b2_ref[l]

        # ---- residual + LayerNorm 2 ----
        z = y + h2
        mu2 = jnp.mean(z, axis=-1, keepdims=True)
        var2 = jnp.mean((z - mu2) ** 2, axis=-1, keepdims=True)
        x = (z - mu2) * jax.lax.rsqrt(var2 + LN_EPS) * g2_ref[l] + be2_ref[l]

    # ---- LM head: lane-dense (VOC_PAD = 128) vocab projection ----
    logits = jnp.dot(x, lmw_ref[...],
                     preferred_element_type=jnp.float32) + lmb_ref[...]
    o_ref[...] = logits.reshape(B, S, -1)


# ----------------------------- params & glue ---------------------------------
def sinusoidal_encoding(max_len, d_model):
    pos = jnp.arange(max_len, dtype=jnp.float32)[:, None]
    two_i = jnp.arange(0, d_model, 2, dtype=jnp.float32)
    div = jnp.power(10000.0, two_i / d_model)
    enc = jnp.zeros((max_len, d_model), jnp.float32)
    enc = enc.at[:, 0::2].set(jnp.sin(pos / div))
    enc = enc.at[:, 1::2].set(jnp.cos(pos / div))
    return enc


def _linear(key, fan_in, fan_out):
    kw, kb = jax.random.split(key)
    lim = 1.0 / math.sqrt(fan_in)
    w = jax.random.uniform(kw, (fan_in, fan_out), jnp.float32, -lim, lim)
    b = jax.random.uniform(kb, (1, fan_out), jnp.float32, -lim, lim)
    return w, b


def init_params(key):
    keys = jax.random.split(key, 2 + N_LAYERS)
    params = {}
    emb = 0.02 * jax.random.normal(keys[0], (DEC_VOC_SIZE, D_MODEL), jnp.float32)
    params["emb"] = emb.at[TRG_PAD_IDX].set(0.0)   # padding_idx row zeroed
    params["pos"] = sinusoidal_encoding(MAX_LEN, D_MODEL)

    layers = []
    for l in range(N_LAYERS):
        lk = jax.random.split(keys[1 + l], 6)
        wq, bq = _linear(lk[0], D_MODEL, D_MODEL)
        wk, bk = _linear(lk[1], D_MODEL, D_MODEL)
        wv, bv = _linear(lk[2], D_MODEL, D_MODEL)
        wo, bo = _linear(lk[3], D_MODEL, D_MODEL)
        w1, b1 = _linear(lk[4], D_MODEL, FFN_HIDDEN)
        w2, b2 = _linear(lk[5], FFN_HIDDEN, D_MODEL)
        layers.append(dict(
            wqkv=jnp.concatenate([wq, wk, wv], axis=1),   # fused [D, 3D]
            bqkv=jnp.concatenate([bq, bk, bv], axis=1),   # fused [1, 3D]
            wo=wo, bo=bo, w1=w1, b1=b1, w2=w2, b2=b2,
            g1=jnp.ones((1, D_MODEL), jnp.float32),
            be1=jnp.zeros((1, D_MODEL), jnp.float32),
            g2=jnp.ones((1, D_MODEL), jnp.float32),
            be2=jnp.zeros((1, D_MODEL), jnp.float32)))
    # stack each parameter kind along a leading layer axis -> one ref each
    params["stacked"] = {k: jnp.stack([lyr[k] for lyr in layers])
                         for k in layers[0]}

    lw, lb = _linear(keys[-1], D_MODEL, DEC_VOC_SIZE)
    # zero-pad vocab to a lane-dense width (64 -> 128); padded logits are 0.
    params["lm_w_pad"] = jnp.pad(lw, ((0, 0), (0, VOC_PAD - DEC_VOC_SIZE)))
    params["lm_b_pad"] = jnp.pad(lb, ((0, 0), (0, VOC_PAD - DEC_VOC_SIZE)))
    return params


def gpt_forward(trg, params):
    """trg: [B, S] int32 token ids -> logits [B, S, DEC_VOC_SIZE] float32."""
    B, S = trg.shape
    D, H = D_MODEL, N_HEADS

    # trg_mask = make_pad_mask(trg, trg) & make_casual_mask(trg, trg)
    not_pad = (trg != TRG_PAD_IDX)
    pad_mask = not_pad[:, :, None] & not_pad[:, None, :]        # [B, S, S]
    causal = jnp.tril(jnp.ones((S, S), dtype=bool))
    mask = (pad_mask & causal[None]).astype(jnp.float32)        # [B, S, S]
    mask_n = jnp.tile(mask, (H, 1, 1))                          # [H*B, S, S]

    # embedding (gather) + sinusoidal positional encoding — glue in plain JAX
    x = params["emb"][trg] + params["pos"][:S][None]            # [B, S, D]
    x = x.reshape(B * S, D)                                     # [B*S, D]

    lp = params["stacked"]
    logits_pad = pl.pallas_call(
        functools.partial(gpt_fused_kernel, n_heads=H, batch=B),
        out_shape=jax.ShapeDtypeStruct((B, S, VOC_PAD), jnp.float32),
    )(x, mask_n,
      lp["wqkv"], lp["bqkv"], lp["wo"], lp["bo"],
      lp["g1"], lp["be1"], lp["w1"], lp["b1"], lp["w2"], lp["b2"],
      lp["g2"], lp["be2"],
      params["lm_w_pad"], params["lm_b_pad"])

    return logits_pad[:, :, :DEC_VOC_SIZE]


# ----------------------------------- main -------------------------------------
if __name__ == "__main__":
    key = jax.random.PRNGKey(0)
    pkey, tkey = jax.random.split(key)
    params = init_params(pkey)

    B, S = 2, 8
    trg = jax.random.randint(tkey, (B, S), 0, DEC_VOC_SIZE, dtype=jnp.int32)
    # exercise the pad mask: make the tail of the second sequence padding
    trg = trg.at[1, 5:].set(TRG_PAD_IDX)

    forward = jax.jit(gpt_forward)
    logits = forward(trg, params)
    jax.block_until_ready(logits)
    assert logits.shape == (B, S, DEC_VOC_SIZE)
    assert bool(jnp.all(jnp.isfinite(logits)))
    print("KERNEL_OK")
</pallas_src>

<mosaic_0001>
module attributes {stable_mosaic.version = 11 : i64} {
  func.func @gpt_fused_kernel(%arg0: memref<16x32xf32, #tpu.memory_space<vmem>>, %arg1: memref<8x8x8xf32, #tpu.memory_space<vmem>>, %arg2: memref<2x32x96xf32, #tpu.memory_space<vmem>>, %arg3: memref<2x1x96xf32, #tpu.memory_space<vmem>>, %arg4: memref<2x32x32xf32, #tpu.memory_space<vmem>>, %arg5: memref<2x1x32xf32, #tpu.memory_space<vmem>>, %arg6: memref<2x1x32xf32, #tpu.memory_space<vmem>>, %arg7: memref<2x1x32xf32, #tpu.memory_space<vmem>>, %arg8: memref<2x32x64xf32, #tpu.memory_space<vmem>>, %arg9: memref<2x1x64xf32, #tpu.memory_space<vmem>>, %arg10: memref<2x64x32xf32, #tpu.memory_space<vmem>>, %arg11: memref<2x1x32xf32, #tpu.memory_space<vmem>>, %arg12: memref<2x1x32xf32, #tpu.memory_space<vmem>>, %arg13: memref<2x1x32xf32, #tpu.memory_space<vmem>>, %arg14: memref<32x128xf32, #tpu.memory_space<vmem>>, %arg15: memref<1x128xf32, #tpu.memory_space<vmem>>, %arg16: memref<2x8x128xf32, #tpu.memory_space<vmem>>) attributes {dimension_semantics = [], scalar_prefetch = 0 : i64, scratch_operands = 0 : i64, tpu.core_type = #tpu.core_type<tc>} {
    %c0 = arith.constant 0 : index
    %c0_0 = arith.constant 0 : index
    %0 = vector.load %arg0[%c0, %c0_0] : memref<16x32xf32, #tpu.memory_space<vmem>>, vector<16x32xf32>
    %c0_1 = arith.constant 0 : index
    %c0_2 = arith.constant 0 : index
    %c0_3 = arith.constant 0 : index
    %1 = vector.load %arg1[%c0_1, %c0_2, %c0_3] : memref<8x8x8xf32, #tpu.memory_space<vmem>>, vector<8x8x8xf32>
    %cst = arith.constant 0.000000e+00 : f32
    %2 = vector.broadcast %cst : f32 to vector<8x8x8xf32>
    %3 = arith.cmpf ogt, %1, %2 : vector<8x8x8xf32>
    %c0_4 = arith.constant 0 : index
    %c0_5 = arith.constant 0 : index
    %c0_6 = arith.constant 0 : index
    %4 = vector.load %arg2[%c0_4, %c0_5, %c0_6] : memref<2x32x96xf32, #tpu.memory_space<vmem>>, vector<1x32x96xf32>
    %5 = vector.shape_cast %4 : vector<1x32x96xf32> to vector<32x96xf32>
    %cst_7 = arith.constant dense<0.000000e+00> : vector<16x96xf32>
    %6 = tpu.matmul %0, %5, %cst_7 {dimension_numbers = #tpu.dot_dimension_numbers<[1], [0], [0], [1], [0, 0, 1, 1], [], []>} : vector<16x32xf32>, vector<32x96xf32>, vector<16x96xf32> -> vector<16x96xf32>
    %c0_8 = arith.constant 0 : index
    %c0_9 = arith.constant 0 : index
    %c0_10 = arith.constant 0 : index
    %7 = vector.load %arg3[%c0_8, %c0_9, %c0_10] : memref<2x1x96xf32, #tpu.memory_space<vmem>>, vector<1x1x96xf32>
    %8 = vector.shape_cast %7 : vector<1x1x96xf32> to vector<1x96xf32>
    %9 = vector.broadcast %8 : vector<1x96xf32> to vector<16x96xf32>
    %10 = arith.addf %6, %9 : vector<16x96xf32>
    %11 = vector.extract_strided_slice %10 {offsets = [0, 0], sizes = [16, 32], strides = [1, 1]} : vector<16x96xf32> to vector<16x32xf32>
    %12 = vector.extract_strided_slice %10 {offsets = [0, 32], sizes = [16, 32], strides = [1, 1]} : vector<16x96xf32> to vector<16x32xf32>
    %13 = vector.extract_strided_slice %10 {offsets = [0, 64], sizes = [16, 32], strides = [1, 1]} : vector<16x96xf32> to vector<16x32xf32>
    %14 = vector.extract_strided_slice %11 {offsets = [0, 0], sizes = [16, 8], strides = [1, 1]} : vector<16x32xf32> to vector<16x8xf32>
    %15 = vector.shape_cast %14 : vector<16x8xf32> to vector<2x8x8xf32>
    %16 = vector.extract_strided_slice %11 {offsets = [0, 8], sizes = [16, 8], strides = [1, 1]} : vector<16x32xf32> to vector<16x8xf32>
    %17 = vector.shape_cast %16 : vector<16x8xf32> to vector<2x8x8xf32>
    %18 = vector.extract_strided_slice %11 {offsets = [0, 16], sizes = [16, 8], strides = [1, 1]} : vector<16x32xf32> to vector<16x8xf32>
    %19 = vector.shape_cast %18 : vector<16x8xf32> to vector<2x8x8xf32>
    %20 = vector.extract_strided_slice %11 {offsets = [0, 24], sizes = [16, 8], strides = [1, 1]} : vector<16x32xf32> to vector<16x8xf32>
    %21 = vector.shape_cast %20 : vector<16x8xf32> to vector<2x8x8xf32>
    %22 = tpu.concatenate %15, %17, %19, %21 in 0 : vector<2x8x8xf32>, vector<2x8x8xf32>, vector<2x8x8xf32>, vector<2x8x8xf32> -> vector<8x8x8xf32>
    %23 = vector.extract_strided_slice %12 {offsets = [0, 0], sizes = [16, 8], strides = [1, 1]} : vector<16x32xf32> to vector<16x8xf32>
    %24 = vector.shape_cast %23 : vector<16x8xf32> to vector<2x8x8xf32>
    %25 = vector.extract_strided_slice %12 {offsets = [0, 8], sizes = [16, 8], strides = [1, 1]} : vector<16x32xf32> to vector<16x8xf32>
    %26 = vector.shape_cast %25 : vector<16x8xf32> to vector<2x8x8xf32>
    %27 = vector.extract_strided_slice %12 {offsets = [0, 16], sizes = [16, 8], strides = [1, 1]} : vector<16x32xf32> to vector<16x8xf32>
    %28 = vector.shape_cast %27 : vector<16x8xf32> to vector<2x8x8xf32>
    %29 = vector.extract_strided_slice %12 {offsets = [0, 24], sizes = [16, 8], strides = [1, 1]} : vector<16x32xf32> to vector<16x8xf32>
    %30 = vector.shape_cast %29 : vector<16x8xf32> to vector<2x8x8xf32>
    %31 = tpu.concatenate %24, %26, %28, %30 in 0 : vector<2x8x8xf32>, vector<2x8x8xf32>, vector<2x8x8xf32>, vector<2x8x8xf32> -> vector<8x8x8xf32>
    %32 = vector.extract_strided_slice %13 {offsets = [0, 0], sizes = [16, 8], strides = [1, 1]} : vector<16x32xf32> to vector<16x8xf32>
    %33 = vector.shape_cast %32 : vector<16x8xf32> to vector<2x8x8xf32>
    %34 = vector.extract_strided_slice %13 {offsets = [0, 8], sizes = [16, 8], strides = [1, 1]} : vector<16x32xf32> to vector<16x8xf32>
    %35 = vector.shape_cast %34 : vector<16x8xf32> to vector<2x8x8xf32>
    %36 = vector.extract_strided_slice %13 {offsets = [0, 16], sizes = [16, 8], strides = [1, 1]} : vector<16x32xf32> to vector<16x8xf32>
    %37 = vector.shape_cast %36 : vector<16x8xf32> to vector<2x8x8xf32>
    %38 = vector.extract_strided_slice %13 {offsets = [0, 24], sizes = [16, 8], strides = [1, 1]} : vector<16x32xf32> to vector<16x8xf32>
    %39 = vector.shape_cast %38 : vector<16x8xf32> to vector<2x8x8xf32>
    %40 = tpu.concatenate %33, %35, %37, %39 in 0 : vector<2x8x8xf32>, vector<2x8x8xf32>, vector<2x8x8xf32>, vector<2x8x8xf32> -> vector<8x8x8xf32>
    "tpu.trace_start"() <{level = 10 : i32, message = "nqd,nkd->nqk"}> : () -> ()
    %cst_11 = arith.constant dense<0.000000e+00> : vector<8x8x8xf32>
    %41 = tpu.matmul %22, %31, %cst_11 {dimension_numbers = #tpu.dot_dimension_numbers<[2], [2], [1], [1], [0, 0, 0, 1, 1, 1], [0], [0]>} : vector<8x8x8xf32>, vector<8x8x8xf32>, vector<8x8x8xf32> -> vector<8x8x8xf32>
    "tpu.trace_stop"() : () -> ()
    %cst_12 = arith.constant 0.353553385 : f32
    %42 = vector.broadcast %cst_12 : f32 to vector<8x8x8xf32>
    %43 = arith.mulf %41, %42 : vector<8x8x8xf32>
    %cst_13 = arith.constant -1.000000e+04 : f32
    %44 = vector.broadcast %cst_13 : f32 to vector<8x8x8xf32>
    %45 = arith.select %3, %43, %44 : vector<8x8x8xi1>, vector<8x8x8xf32>
    %cst_14 = arith.constant dense<0xFF800000> : vector<8x8xf32>
    %46 = vector.multi_reduction <maximumf>, %45, %cst_14 [2] : vector<8x8x8xf32> to vector<8x8xf32>
    %47 = vector.shape_cast %46 : vector<8x8xf32> to vector<8x8x1xf32>
    %48 = vector.broadcast %47 : vector<8x8x1xf32> to vector<8x8x8xf32>
    %49 = arith.subf %45, %48 : vector<8x8x8xf32>
    %50 = math.exp %49 : vector<8x8x8xf32>
    %cst_15 = arith.constant dense<0.000000e+00> : vector<8x8xf32>
    %51 = vector.multi_reduction <add>, %50, %cst_15 [2] : vector<8x8x8xf32> to vector<8x8xf32>
    %52 = vector.shape_cast %51 : vector<8x8xf32> to vector<8x8x1xf32>
    %53 = tpu.reciprocal %52 {approx = true} : vector<8x8x1xf32> -> vector<8x8x1xf32>
    %54 = vector.broadcast %53 : vector<8x8x1xf32> to vector<8x8x8xf32>
    %55 = arith.mulf %50, %54 : vector<8x8x8xf32>
    "tpu.trace_start"() <{level = 10 : i32, message = "nqk,nkd->nqd"}> : () -> ()
    %cst_16 = arith.constant dense<0.000000e+00> : vector<8x8x8xf32>
    %56 = tpu.matmul %55, %40, %cst_16 {dimension_numbers = #tpu.dot_dimension_numbers<[2], [1], [1], [2], [0, 0, 0, 1, 1, 2], [0], [0]>} : vector<8x8x8xf32>, vector<8x8x8xf32>, vector<8x8x8xf32> -> vector<8x8x8xf32>
    "tpu.trace_stop"() : () -> ()
    %c0_17 = arith.constant 0 : index
    %c0_18 = arith.constant 0 : index
    %c0_19 = arith.constant 0 : index
    %57 = vector.load %arg4[%c0_17, %c0_18, %c0_19] : memref<2x32x32xf32, #tpu.memory_space<vmem>>, vector<1x32x32xf32>
    %58 = vector.shape_cast %57 : vector<1x32x32xf32> to vector<32x32xf32>
    %59 = vector.extract_strided_slice %56 {offsets = [0, 0, 0], sizes = [2, 8, 8], strides = [1, 1, 1]} : vector<8x8x8xf32> to vector<2x8x8xf32>
    %60 = vector.shape_cast %59 : vector<2x8x8xf32> to vector<16x8xf32>
    %61 = vector.extract_strided_slice %58 {offsets = [0, 0], sizes = [8, 32], strides = [1, 1]} : vector<32x32xf32> to vector<8x32xf32>
    %cst_20 = arith.constant dense<0.000000e+00> : vector<16x32xf32>
    %62 = tpu.matmul %60, %61, %cst_20 {dimension_numbers = #tpu.dot_dimension_numbers<[1], [0], [0], [1], [0, 0, 1, 1], [], []>} : vector<16x8xf32>, vector<8x32xf32>, vector<16x32xf32> -> vector<16x32xf32>
    %63 = vector.extract_strided_slice %56 {offsets = [2, 0, 0], sizes = [2, 8, 8], strides = [1, 1, 1]} : vector<8x8x8xf32> to vector<2x8x8xf32>
    %64 = vector.shape_cast %63 : vector<2x8x8xf32> to vector<16x8xf32>
    %65 = vector.extract_strided_slice %58 {offsets = [8, 0], sizes = [8, 32], strides = [1, 1]} : vector<32x32xf32> to vector<8x32xf32>
    %cst_21 = arith.constant dense<0.000000e+00> : vector<16x32xf32>
    %66 = tpu.matmul %64, %65, %cst_21 {dimension_numbers = #tpu.dot_dimension_numbers<[1], [0], [0], [1], [0, 0, 1, 1], [], []>} : vector<16x8xf32>, vector<8x32xf32>, vector<16x32xf32> -> vector<16x32xf32>
    %67 = vector.extract_strided_slice %56 {offsets = [4, 0, 0], sizes = [2, 8, 8], strides = [1, 1, 1]} : vector<8x8x8xf32> to vector<2x8x8xf32>
    %68 = vector.shape_cast %67 : vector<2x8x8xf32> to vector<16x8xf32>
    %69 = vector.extract_strided_slice %58 {offsets = [16, 0], sizes = [8, 32], strides = [1, 1]} : vector<32x32xf32> to vector<8x32xf32>
    %cst_22 = arith.constant dense<0.000000e+00> : vector<16x32xf32>
    %70 = tpu.matmul %68, %69, %cst_22 {dimension_numbers = #tpu.dot_dimension_numbers<[1], [0], [0], [1], [0, 0, 1, 1], [], []>} : vector<16x8xf32>, vector<8x32xf32>, vector<16x32xf32> -> vector<16x32xf32>
    %71 = vector.extract_strided_slice %56 {offsets = [6, 0, 0], sizes = [2, 8, 8], strides = [1, 1, 1]} : vector<8x8x8xf32> to vector<2x8x8xf32>
    %72 = vector.shape_cast %71 : vector<2x8x8xf32> to vector<16x8xf32>
    %73 = vector.extract_strided_slice %58 {offsets = [24, 0], sizes = [8, 32], strides = [1, 1]} : vector<32x32xf32> to vector<8x32xf32>
    %cst_23 = arith.constant dense<0.000000e+00> : vector<16x32xf32>
    %74 = tpu.matmul %72, %73, %cst_23 {dimension_numbers = #tpu.dot_dimension_numbers<[1], [0], [0], [1], [0, 0, 1, 1], [], []>} : vector<16x8xf32>, vector<8x32xf32>, vector<16x32xf32> -> vector<16x32xf32>
    %cst_24 = arith.constant 0.000000e+00 : f32
    %75 = vector.broadcast %cst_24 : f32 to vector<16x32xf32>
    %76 = arith.addf %75, %62 : vector<16x32xf32>
    %77 = arith.addf %76, %66 : vector<16x32xf32>
    %78 = arith.addf %77, %70 : vector<16x32xf32>
    %79 = arith.addf %78, %74 : vector<16x32xf32>
    %c0_25 = arith.constant 0 : index
    %c0_26 = arith.constant 0 : index
    %c0_27 = arith.constant 0 : index
    %80 = vector.load %arg5[%c0_25, %c0_26, %c0_27] : memref<2x1x32xf32, #tpu.memory_space<vmem>>, vector<1x1x32xf32>
    %81 = vector.shape_cast %80 : vector<1x1x32xf32> to vector<1x32xf32>
    %82 = vector.broadcast %81 : vector<1x32xf32> to vector<16x32xf32>
    %83 = arith.addf %79, %82 : vector<16x32xf32>
    %84 = arith.addf %0, %83 : vector<16x32xf32>
    %cst_28 = arith.constant dense<0.000000e+00> : vector<16xf32>
    %85 = vector.multi_reduction <add>, %84, %cst_28 [1] : vector<16x32xf32> to vector<16xf32>
    %86 = vector.shape_cast %85 : vector<16xf32> to vector<16x1xf32>
    %cst_29 = arith.constant 3.200000e+01 : f32
    %87 = vector.broadcast %cst_29 : f32 to vector<16x1xf32>
    %88 = arith.divf %86, %87 : vector<16x1xf32>
    %89 = vector.broadcast %88 : vector<16x1xf32> to vector<16x32xf32>
    %90 = arith.subf %84, %89 : vector<16x32xf32>
    %91 = arith.mulf %90, %90 : vector<16x32xf32>
    %cst_30 = arith.constant dense<0.000000e+00> : vector<16xf32>
    %92 = vector.multi_reduction <add>, %91, %cst_30 [1] : vector<16x32xf32> to vector<16xf32>
    %93 = vector.shape_cast %92 : vector<16xf32> to vector<16x1xf32>
    %cst_31 = arith.constant 3.200000e+01 : f32
    %94 = vector.broadcast %cst_31 : f32 to vector<16x1xf32>
    %95 = arith.divf %93, %94 : vector<16x1xf32>
    %96 = vector.broadcast %88 : vector<16x1xf32> to vector<16x32xf32>
    %97 = arith.subf %84, %96 : vector<16x32xf32>
    %cst_32 = arith.constant 9.99999996E-13 : f32
    %98 = vector.broadcast %cst_32 : f32 to vector<16x1xf32>
    %99 = arith.addf %95, %98 : vector<16x1xf32>
    %100 = math.rsqrt %99 : vector<16x1xf32>
    %101 = vector.broadcast %100 : vector<16x1xf32> to vector<16x32xf32>
    %102 = arith.mulf %97, %101 : vector<16x32xf32>
    %c0_33 = arith.constant 0 : index
    %c0_34 = arith.constant 0 : index
    %c0_35 = arith.constant 0 : index
    %103 = vector.load %arg6[%c0_33, %c0_34, %c0_35] : memref<2x1x32xf32, #tpu.memory_space<vmem>>, vector<1x1x32xf32>
    %104 = vector.shape_cast %103 : vector<1x1x32xf32> to vector<1x32xf32>
    %105 = vector.broadcast %104 : vector<1x32xf32> to vector<16x32xf32>
    %106 = arith.mulf %102, %105 : vector<16x32xf32>
    %c0_36 = arith.constant 0 : index
    %c0_37 = arith.constant 0 : index
    %c0_38 = arith.constant 0 : index
    %107 = vector.load %arg7[%c0_36, %c0_37, %c0_38] : memref<2x1x32xf32, #tpu.memory_space<vmem>>, vector<1x1x32xf32>
    %108 = vector.shape_cast %107 : vector<1x1x32xf32> to vector<1x32xf32>
    %109 = vector.broadcast %108 : vector<1x32xf32> to vector<16x32xf32>
    %110 = arith.addf %106, %109 : vector<16x32xf32>
    %c0_39 = arith.constant 0 : index
    %c0_40 = arith.constant 0 : index
    %c0_41 = arith.constant 0 : index
    %111 = vector.load %arg8[%c0_39, %c0_40, %c0_41] : memref<2x32x64xf32, #tpu.memory_space<vmem>>, vector<1x32x64xf32>
    %112 = vector.shape_cast %111 : vector<1x32x64xf32> to vector<32x64xf32>
    %cst_42 = arith.constant dense<0.000000e+00> : vector<16x64xf32>
    %113 = tpu.matmul %110, %112, %cst_42 {dimension_numbers = #tpu.dot_dimension_numbers<[1], [0], [0], [1], [0, 0, 1, 1], [], []>} : vector<16x32xf32>, vector<32x64xf32>, vector<16x64xf32> -> vector<16x64xf32>
    %c0_43 = arith.constant 0 : index
    %c0_44 = arith.constant 0 : index
    %c0_45 = arith.constant 0 : index
    %114 = vector.load %arg9[%c0_43, %c0_44, %c0_45] : memref<2x1x64xf32, #tpu.memory_space<vmem>>, vector<1x1x64xf32>
    %115 = vector.shape_cast %114 : vector<1x1x64xf32> to vector<1x64xf32>
    %116 = vector.broadcast %115 : vector<1x64xf32> to vector<16x64xf32>
    %117 = arith.addf %113, %116 : vector<16x64xf32>
    %cst_46 = arith.constant 0.000000e+00 : f32
    %118 = vector.broadcast %cst_46 : f32 to vector<16x64xf32>
    %119 = arith.maximumf %117, %118 : vector<16x64xf32>
    %c0_47 = arith.constant 0 : index
    %c0_48 = arith.constant 0 : index
    %c0_49 = arith.constant 0 : index
    %120 = vector.load %arg10[%c0_47, %c0_48, %c0_49] : memref<2x64x32xf32, #tpu.memory_space<vmem>>, vector<1x64x32xf32>
    %121 = vector.shape_cast %120 : vector<1x64x32xf32> to vector<64x32xf32>
    %cst_50 = arith.constant dense<0.000000e+00> : vector<16x32xf32>
    %122 = tpu.matmul %119, %121, %cst_50 {dimension_numbers = #tpu.dot_dimension_numbers<[1], [0], [0], [1], [0, 0, 1, 1], [], []>} : vector<16x64xf32>, vector<64x32xf32>, vector<16x32xf32> -> vector<16x32xf32>
    %c0_51 = arith.constant 0 : index
    %c0_52 = arith.constant 0 : index
    %c0_53 = arith.constant 0 : index
    %123 = vector.load %arg11[%c0_51, %c0_52, %c0_53] : memref<2x1x32xf32, #tpu.memory_space<vmem>>, vector<1x1x32xf32>
    %124 = vector.shape_cast %123 : vector<1x1x32xf32> to vector<1x32xf32>
    %125 = vector.broadcast %124 : vector<1x32xf32> to vector<16x32xf32>
    %126 = arith.addf %122, %125 : vector<16x32xf32>
    %127 = arith.addf %110, %126 : vector<16x32xf32>
    %cst_54 = arith.constant dense<0.000000e+00> : vector<16xf32>
    %128 = vector.multi_reduction <add>, %127, %cst_54 [1] : vector<16x32xf32> to vector<16xf32>
    %129 = vector.shape_cast %128 : vector<16xf32> to vector<16x1xf32>
    %cst_55 = arith.constant 3.200000e+01 : f32
    %130 = vector.broadcast %cst_55 : f32 to vector<16x1xf32>
    %131 = arith.divf %129, %130 : vector<16x1xf32>
    %132 = vector.broadcast %131 : vector<16x1xf32> to vector<16x32xf32>
    %133 = arith.subf %127, %132 : vector<16x32xf32>
    %134 = arith.mulf %133, %133 : vector<16x32xf32>
    %cst_56 = arith.constant dense<0.000000e+00> : vector<16xf32>
    %135 = vector.multi_reduction <add>, %134, %cst_56 [1] : vector<16x32xf32> to vector<16xf32>
    %136 = vector.shape_cast %135 : vector<16xf32> to vector<16x1xf32>
    %cst_57 = arith.constant 3.200000e+01 : f32
    %137 = vector.broadcast %cst_57 : f32 to vector<16x1xf32>
    %138 = arith.divf %136, %137 : vector<16x1xf32>
    %139 = vector.broadcast %131 : vector<16x1xf32> to vector<16x32xf32>
    %140 = arith.subf %127, %139 : vector<16x32xf32>
    %cst_58 = arith.constant 9.99999996E-13 : f32
    %141 = vector.broadcast %cst_58 : f32 to vector<16x1xf32>
    %142 = arith.addf %138, %141 : vector<16x1xf32>
    %143 = math.rsqrt %142 : vector<16x1xf32>
    %144 = vector.broadcast %143 : vector<16x1xf32> to vector<16x32xf32>
    %145 = arith.mulf %140, %144 : vector<16x32xf32>
    %c0_59 = arith.constant 0 : index
    %c0_60 = arith.constant 0 : index
    %c0_61 = arith.constant 0 : index
    %146 = vector.load %arg12[%c0_59, %c0_60, %c0_61] : memref<2x1x32xf32, #tpu.memory_space<vmem>>, vector<1x1x32xf32>
    %147 = vector.shape_cast %146 : vector<1x1x32xf32> to vector<1x32xf32>
    %148 = vector.broadcast %147 : vector<1x32xf32> to vector<16x32xf32>
    %149 = arith.mulf %145, %148 : vector<16x32xf32>
    %c0_62 = arith.constant 0 : index
    %c0_63 = arith.constant 0 : index
    %c0_64 = arith.constant 0 : index
    %150 = vector.load %arg13[%c0_62, %c0_63, %c0_64] : memref<2x1x32xf32, #tpu.memory_space<vmem>>, vector<1x1x32xf32>
    %151 = vector.shape_cast %150 : vector<1x1x32xf32> to vector<1x32xf32>
    %152 = vector.broadcast %151 : vector<1x32xf32> to vector<16x32xf32>
    %153 = arith.addf %149, %152 : vector<16x32xf32>
    %c1 = arith.constant 1 : index
    %c0_65 = arith.constant 0 : index
    %c0_66 = arith.constant 0 : index
    %154 = vector.load %arg2[%c1, %c0_65, %c0_66] : memref<2x32x96xf32, #tpu.memory_space<vmem>>, vector<1x32x96xf32>
    %155 = vector.shape_cast %154 : vector<1x32x96xf32> to vector<32x96xf32>
    %cst_67 = arith.constant dense<0.000000e+00> : vector<16x96xf32>
    %156 = tpu.matmul %153, %155, %cst_67 {dimension_numbers = #tpu.dot_dimension_numbers<[1], [0], [0], [1], [0, 0, 1, 1], [], []>} : vector<16x32xf32>, vector<32x96xf32>, vector<16x96xf32> -> vector<16x96xf32>
    %c1_68 = arith.constant 1 : index
    %c0_69 = arith.constant 0 : index
    %c0_70 = arith.constant 0 : index
    %157 = vector.load %arg3[%c1_68, %c0_69, %c0_70] : memref<2x1x96xf32, #tpu.memory_space<vmem>>, vector<1x1x96xf32>
    %158 = vector.shape_cast %157 : vector<1x1x96xf32> to vector<1x96xf32>
    %159 = vector.broadcast %158 : vector<1x96xf32> to vector<16x96xf32>
    %160 = arith.addf %156, %159 : vector<16x96xf32>
    %161 = vector.extract_strided_slice %160 {offsets = [0, 0], sizes = [16, 32], strides = [1, 1]} : vector<16x96xf32> to vector<16x32xf32>
    %162 = vector.extract_strided_slice %160 {offsets = [0, 32], sizes = [16, 32], strides = [1, 1]} : vector<16x96xf32> to vector<16x32xf32>
    %163 = vector.extract_strided_slice %160 {offsets = [0, 64], sizes = [16, 32], strides = [1, 1]} : vector<16x96xf32> to vector<16x32xf32>
    %164 = vector.extract_strided_slice %161 {offsets = [0, 0], sizes = [16, 8], strides = [1, 1]} : vector<16x32xf32> to vector<16x8xf32>
    %165 = vector.shape_cast %164 : vector<16x8xf32> to vector<2x8x8xf32>
    %166 = vector.extract_strided_slice %161 {offsets = [0, 8], sizes = [16, 8], strides = [1, 1]} : vector<16x32xf32> to vector<16x8xf32>
    %167 = vector.shape_cast %166 : vector<16x8xf32> to vector<2x8x8xf32>
    %168 = vector.extract_strided_slice %161 {offsets = [0, 16], sizes = [16, 8], strides = [1, 1]} : vector<16x32xf32> to vector<16x8xf32>
    %169 = vector.shape_cast %168 : vector<16x8xf32> to vector<2x8x8xf32>
    %170 = vector.extract_strided_slice %161 {offsets = [0, 24], sizes = [16, 8], strides = [1, 1]} : vector<16x32xf32> to vector<16x8xf32>
    %171 = vector.shape_cast %170 : vector<16x8xf32> to vector<2x8x8xf32>
    %172 = tpu.concatenate %165, %167, %169, %171 in 0 : vector<2x8x8xf32>, vector<2x8x8xf32>, vector<2x8x8xf32>, vector<2x8x8xf32> -> vector<8x8x8xf32>
    %173 = vector.extract_strided_slice %162 {offsets = [0, 0], sizes = [16, 8], strides = [1, 1]} : vector<16x32xf32> to vector<16x8xf32>
    %174 = vector.shape_cast %173 : vector<16x8xf32> to vector<2x8x8xf32>
    %175 = vector.extract_strided_slice %162 {offsets = [0, 8], sizes = [16, 8], strides = [1, 1]} : vector<16x32xf32> to vector<16x8xf32>
    %176 = vector.shape_cast %175 : vector<16x8xf32> to vector<2x8x8xf32>
    %177 = vector.extract_strided_slice %162 {offsets = [0, 16], sizes = [16, 8], strides = [1, 1]} : vector<16x32xf32> to vector<16x8xf32>
    %178 = vector.shape_cast %177 : vector<16x8xf32> to vector<2x8x8xf32>
    %179 = vector.extract_strided_slice %162 {offsets = [0, 24], sizes = [16, 8], strides = [1, 1]} : vector<16x32xf32> to vector<16x8xf32>
    %180 = vector.shape_cast %179 : vector<16x8xf32> to vector<2x8x8xf32>
    %181 = tpu.concatenate %174, %176, %178, %180 in 0 : vector<2x8x8xf32>, vector<2x8x8xf32>, vector<2x8x8xf32>, vector<2x8x8xf32> -> vector<8x8x8xf32>
    %182 = vector.extract_strided_slice %163 {offsets = [0, 0], sizes = [16, 8], strides = [1, 1]} : vector<16x32xf32> to vector<16x8xf32>
    %183 = vector.shape_cast %182 : vector<16x8xf32> to vector<2x8x8xf32>
    %184 = vector.extract_strided_slice %163 {offsets = [0, 8], sizes = [16, 8], strides = [1, 1]} : vector<16x32xf32> to vector<16x8xf32>
    %185 = vector.shape_cast %184 : vector<16x8xf32> to vector<2x8x8xf32>
    %186 = vector.extract_strided_slice %163 {offsets = [0, 16], sizes = [16, 8], strides = [1, 1]} : vector<16x32xf32> to vector<16x8xf32>
    %187 = vector.shape_cast %186 : vector<16x8xf32> to vector<2x8x8xf32>
    %188 = vector.extract_strided_slice %163 {offsets = [0, 24], sizes = [16, 8], strides = [1, 1]} : vector<16x32xf32> to vector<16x8xf32>
    %189 = vector.shape_cast %188 : vector<16x8xf32> to vector<2x8x8xf32>
    %190 = tpu.concatenate %183, %185, %187, %189 in 0 : vector<2x8x8xf32>, vector<2x8x8xf32>, vector<2x8x8xf32>, vector<2x8x8xf32> -> vector<8x8x8xf32>
    "tpu.trace_start"() <{level = 10 : i32, message = "nqd,nkd->nqk"}> : () -> ()
    %cst_71 = arith.constant dense<0.000000e+00> : vector<8x8x8xf32>
    %191 = tpu.matmul %172, %181, %cst_71 {dimension_numbers = #tpu.dot_dimension_numbers<[2], [2], [1], [1], [0, 0, 0, 1, 1, 1], [0], [0]>} : vector<8x8x8xf32>, vector<8x8x8xf32>, vector<8x8x8xf32> -> vector<8x8x8xf32>
    "tpu.trace_stop"() : () -> ()
    %cst_72 = arith.constant 0.353553385 : f32
    %192 = vector.broadcast %cst_72 : f32 to vector<8x8x8xf32>
    %193 = arith.mulf %191, %192 : vector<8x8x8xf32>
    %cst_73 = arith.constant -1.000000e+04 : f32
    %194 = vector.broadcast %cst_73 : f32 to vector<8x8x8xf32>
    %195 = arith.select %3, %193, %194 : vector<8x8x8xi1>, vector<8x8x8xf32>
    %cst_74 = arith.constant dense<0xFF800000> : vector<8x8xf32>
    %196 = vector.multi_reduction <maximumf>, %195, %cst_74 [2] : vector<8x8x8xf32> to vector<8x8xf32>
    %197 = vector.shape_cast %196 : vector<8x8xf32> to vector<8x8x1xf32>
    %198 = vector.broadcast %197 : vector<8x8x1xf32> to vector<8x8x8xf32>
    %199 = arith.subf %195, %198 : vector<8x8x8xf32>
    %200 = math.exp %199 : vector<8x8x8xf32>
    %cst_75 = arith.constant dense<0.000000e+00> : vector<8x8xf32>
    %201 = vector.multi_reduction <add>, %200, %cst_75 [2] : vector<8x8x8xf32> to vector<8x8xf32>
    %202 = vector.shape_cast %201 : vector<8x8xf32> to vector<8x8x1xf32>
    %203 = tpu.reciprocal %202 {approx = true} : vector<8x8x1xf32> -> vector<8x8x1xf32>
    %204 = vector.broadcast %203 : vector<8x8x1xf32> to vector<8x8x8xf32>
    %205 = arith.mulf %200, %204 : vector<8x8x8xf32>
    "tpu.trace_start"() <{level = 10 : i32, message = "nqk,nkd->nqd"}> : () -> ()
    %cst_76 = arith.constant dense<0.000000e+00> : vector<8x8x8xf32>
    %206 = tpu.matmul %205, %190, %cst_76 {dimension_numbers = #tpu.dot_dimension_numbers<[2], [1], [1], [2], [0, 0, 0, 1, 1, 2], [0], [0]>} : vector<8x8x8xf32>, vector<8x8x8xf32>, vector<8x8x8xf32> -> vector<8x8x8xf32>
    "tpu.trace_stop"() : () -> ()
    %c1_77 = arith.constant 1 : index
    %c0_78 = arith.constant 0 : index
    %c0_79 = arith.constant 0 : index
    %207 = vector.load %arg4[%c1_77, %c0_78, %c0_79] : memref<2x32x32xf32, #tpu.memory_space<vmem>>, vector<1x32x32xf32>
    %208 = vector.shape_cast %207 : vector<1x32x32xf32> to vector<32x32xf32>
    %209 = vector.extract_strided_slice %206 {offsets = [0, 0, 0], sizes = [2, 8, 8], strides = [1, 1, 1]} : vector<8x8x8xf32> to vector<2x8x8xf32>
    %210 = vector.shape_cast %209 : vector<2x8x8xf32> to vector<16x8xf32>
    %211 = vector.extract_strided_slice %208 {offsets = [0, 0], sizes = [8, 32], strides = [1, 1]} : vector<32x32xf32> to vector<8x32xf32>
    %cst_80 = arith.constant dense<0.000000e+00> : vector<16x32xf32>
    %212 = tpu.matmul %210, %211, %cst_80 {dimension_numbers = #tpu.dot_dimension_numbers<[1], [0], [0], [1], [0, 0, 1, 1], [], []>} : vector<16x8xf32>, vector<8x32xf32>, vector<16x32xf32> -> vector<16x32xf32>
    %213 = vector.extract_strided_slice %206 {offsets = [2, 0, 0], sizes = [2, 8, 8], strides = [1, 1, 1]} : vector<8x8x8xf32> to vector<2x8x8xf32>
    %214 = vector.shape_cast %213 : vector<2x8x8xf32> to vector<16x8xf32>
    %215 = vector.extract_strided_slice %208 {offsets = [8, 0], sizes = [8, 32], strides = [1, 1]} : vector<32x32xf32> to vector<8x32xf32>
    %cst_81 = arith.constant dense<0.000000e+00> : vector<16x32xf32>
    %216 = tpu.matmul %214, %215, %cst_81 {dimension_numbers = #tpu.dot_dimension_numbers<[1], [0], [0], [1], [0, 0, 1, 1], [], []>} : vector<16x8xf32>, vector<8x32xf32>, vector<16x32xf32> -> vector<16x32xf32>
    %217 = vector.extract_strided_slice %206 {offsets = [4, 0, 0], sizes = [2, 8, 8], strides = [1, 1, 1]} : vector<8x8x8xf32> to vector<2x8x8xf32>
    %218 = vector.shape_cast %217 : vector<2x8x8xf32> to vector<16x8xf32>
    %219 = vector.extract_strided_slice %208 {offsets = [16, 0], sizes = [8, 32], strides = [1, 1]} : vector<32x32xf32> to vector<8x32xf32>
    %cst_82 = arith.constant dense<0.000000e+00> : vector<16x32xf32>
    %220 = tpu.matmul %218, %219, %cst_82 {dimension_numbers = #tpu.dot_dimension_numbers<[1], [0], [0], [1], [0, 0, 1, 1], [], []>} : vector<16x8xf32>, vector<8x32xf32>, vector<16x32xf32> -> vector<16x32xf32>
    %221 = vector.extract_strided_slice %206 {offsets = [6, 0, 0], sizes = [2, 8, 8], strides = [1, 1, 1]} : vector<8x8x8xf32> to vector<2x8x8xf32>
    %222 = vector.shape_cast %221 : vector<2x8x8xf32> to vector<16x8xf32>
    %223 = vector.extract_strided_slice %208 {offsets = [24, 0], sizes = [8, 32], strides = [1, 1]} : vector<32x32xf32> to vector<8x32xf32>
    %cst_83 = arith.constant dense<0.000000e+00> : vector<16x32xf32>
    %224 = tpu.matmul %222, %223, %cst_83 {dimension_numbers = #tpu.dot_dimension_numbers<[1], [0], [0], [1], [0, 0, 1, 1], [], []>} : vector<16x8xf32>, vector<8x32xf32>, vector<16x32xf32> -> vector<16x32xf32>
    %cst_84 = arith.constant 0.000000e+00 : f32
    %225 = vector.broadcast %cst_84 : f32 to vector<16x32xf32>
    %226 = arith.addf %225, %212 : vector<16x32xf32>
    %227 = arith.addf %226, %216 : vector<16x32xf32>
    %228 = arith.addf %227, %220 : vector<16x32xf32>
    %229 = arith.addf %228, %224 : vector<16x32xf32>
    %c1_85 = arith.constant 1 : index
    %c0_86 = arith.constant 0 : index
    %c0_87 = arith.constant 0 : index
    %230 = vector.load %arg5[%c1_85, %c0_86, %c0_87] : memref<2x1x32xf32, #tpu.memory_space<vmem>>, vector<1x1x32xf32>
    %231 = vector.shape_cast %230 : vector<1x1x32xf32> to vector<1x32xf32>
    %232 = vector.broadcast %231 : vector<1x32xf32> to vector<16x32xf32>
    %233 = arith.addf %229, %232 : vector<16x32xf32>
    %234 = arith.addf %153, %233 : vector<16x32xf32>
    %cst_88 = arith.constant dense<0.000000e+00> : vector<16xf32>
    %235 = vector.multi_reduction <add>, %234, %cst_88 [1] : vector<16x32xf32> to vector<16xf32>
    %236 = vector.shape_cast %235 : vector<16xf32> to vector<16x1xf32>
    %cst_89 = arith.constant 3.200000e+01 : f32
    %237 = vector.broadcast %cst_89 : f32 to vector<16x1xf32>
    %238 = arith.divf %236, %237 : vector<16x1xf32>
    %239 = vector.broadcast %238 : vector<16x1xf32> to vector<16x32xf32>
    %240 = arith.subf %234, %239 : vector<16x32xf32>
    %241 = arith.mulf %240, %240 : vector<16x32xf32>
    %cst_90 = arith.constant dense<0.000000e+00> : vector<16xf32>
    %242 = vector.multi_reduction <add>, %241, %cst_90 [1] : vector<16x32xf32> to vector<16xf32>
    %243 = vector.shape_cast %242 : vector<16xf32> to vector<16x1xf32>
    %cst_91 = arith.constant 3.200000e+01 : f32
    %244 = vector.broadcast %cst_91 : f32 to vector<16x1xf32>
    %245 = arith.divf %243, %244 : vector<16x1xf32>
    %246 = vector.broadcast %238 : vector<16x1xf32> to vector<16x32xf32>
    %247 = arith.subf %234, %246 : vector<16x32xf32>
    %cst_92 = arith.constant 9.99999996E-13 : f32
    %248 = vector.broadcast %cst_92 : f32 to vector<16x1xf32>
    %249 = arith.addf %245, %248 : vector<16x1xf32>
    %250 = math.rsqrt %249 : vector<16x1xf32>
    %251 = vector.broadcast %250 : vector<16x1xf32> to vector<16x32xf32>
    %252 = arith.mulf %247, %251 : vector<16x32xf32>
    %c1_93 = arith.constant 1 : index
    %c0_94 = arith.constant 0 : index
    %c0_95 = arith.constant 0 : index
    %253 = vector.load %arg6[%c1_93, %c0_94, %c0_95] : memref<2x1x32xf32, #tpu.memory_space<vmem>>, vector<1x1x32xf32>
    %254 = vector.shape_cast %253 : vector<1x1x32xf32> to vector<1x32xf32>
    %255 = vector.broadcast %254 : vector<1x32xf32> to vector<16x32xf32>
    %256 = arith.mulf %252, %255 : vector<16x32xf32>
    %c1_96 = arith.constant 1 : index
    %c0_97 = arith.constant 0 : index
    %c0_98 = arith.constant 0 : index
    %257 = vector.load %arg7[%c1_96, %c0_97, %c0_98] : memref<2x1x32xf32, #tpu.memory_space<vmem>>, vector<1x1x32xf32>
    %258 = vector.shape_cast %257 : vector<1x1x32xf32> to vector<1x32xf32>
    %259 = vector.broadcast %258 : vector<1x32xf32> to vector<16x32xf32>
    %260 = arith.addf %256, %259 : vector<16x32xf32>
    %c1_99 = arith.constant 1 : index
    %c0_100 = arith.constant 0 : index
    %c0_101 = arith.constant 0 : index
    %261 = vector.load %arg8[%c1_99, %c0_100, %c0_101] : memref<2x32x64xf32, #tpu.memory_space<vmem>>, vector<1x32x64xf32>
    %262 = vector.shape_cast %261 : vector<1x32x64xf32> to vector<32x64xf32>
    %cst_102 = arith.constant dense<0.000000e+00> : vector<16x64xf32>
    %263 = tpu.matmul %260, %262, %cst_102 {dimension_numbers = #tpu.dot_dimension_numbers<[1], [0], [0], [1], [0, 0, 1, 1], [], []>} : vector<16x32xf32>, vector<32x64xf32>, vector<16x64xf32> -> vector<16x64xf32>
    %c1_103 = arith.constant 1 : index
    %c0_104 = arith.constant 0 : index
    %c0_105 = arith.constant 0 : index
    %264 = vector.load %arg9[%c1_103, %c0_104, %c0_105] : memref<2x1x64xf32, #tpu.memory_space<vmem>>, vector<1x1x64xf32>
    %265 = vector.shape_cast %264 : vector<1x1x64xf32> to vector<1x64xf32>
    %266 = vector.broadcast %265 : vector<1x64xf32> to vector<16x64xf32>
    %267 = arith.addf %263, %266 : vector<16x64xf32>
    %cst_106 = arith.constant 0.000000e+00 : f32
    %268 = vector.broadcast %cst_106 : f32 to vector<16x64xf32>
    %269 = arith.maximumf %267, %268 : vector<16x64xf32>
    %c1_107 = arith.constant 1 : index
    %c0_108 = arith.constant 0 : index
    %c0_109 = arith.constant 0 : index
    %270 = vector.load %arg10[%c1_107, %c0_108, %c0_109] : memref<2x64x32xf32, #tpu.memory_space<vmem>>, vector<1x64x32xf32>
    %271 = vector.shape_cast %270 : vector<1x64x32xf32> to vector<64x32xf32>
    %cst_110 = arith.constant dense<0.000000e+00> : vector<16x32xf32>
    %272 = tpu.matmul %269, %271, %cst_110 {dimension_numbers = #tpu.dot_dimension_numbers<[1], [0], [0], [1], [0, 0, 1, 1], [], []>} : vector<16x64xf32>, vector<64x32xf32>, vector<16x32xf32> -> vector<16x32xf32>
    %c1_111 = arith.constant 1 : index
    %c0_112 = arith.constant 0 : index
    %c0_113 = arith.constant 0 : index
    %273 = vector.load %arg11[%c1_111, %c0_112, %c0_113] : memref<2x1x32xf32, #tpu.memory_space<vmem>>, vector<1x1x32xf32>
    %274 = vector.shape_cast %273 : vector<1x1x32xf32> to vector<1x32xf32>
    %275 = vector.broadcast %274 : vector<1x32xf32> to vector<16x32xf32>
    %276 = arith.addf %272, %275 : vector<16x32xf32>
    %277 = arith.addf %260, %276 : vector<16x32xf32>
    %cst_114 = arith.constant dense<0.000000e+00> : vector<16xf32>
    %278 = vector.multi_reduction <add>, %277, %cst_114 [1] : vector<16x32xf32> to vector<16xf32>
    %279 = vector.shape_cast %278 : vector<16xf32> to vector<16x1xf32>
    %cst_115 = arith.constant 3.200000e+01 : f32
    %280 = vector.broadcast %cst_115 : f32 to vector<16x1xf32>
    %281 = arith.divf %279, %280 : vector<16x1xf32>
    %282 = vector.broadcast %281 : vector<16x1xf32> to vector<16x32xf32>
    %283 = arith.subf %277, %282 : vector<16x32xf32>
    %284 = arith.mulf %283, %283 : vector<16x32xf32>
    %cst_116 = arith.constant dense<0.000000e+00> : vector<16xf32>
    %285 = vector.multi_reduction <add>, %284, %cst_116 [1] : vector<16x32xf32> to vector<16xf32>
    %286 = vector.shape_cast %285 : vector<16xf32> to vector<16x1xf32>
    %cst_117 = arith.constant 3.200000e+01 : f32
    %287 = vector.broadcast %cst_117 : f32 to vector<16x1xf32>
    %288 = arith.divf %286, %287 : vector<16x1xf32>
    %289 = vector.broadcast %281 : vector<16x1xf32> to vector<16x32xf32>
    %290 = arith.subf %277, %289 : vector<16x32xf32>
    %cst_118 = arith.constant 9.99999996E-13 : f32
    %291 = vector.broadcast %cst_118 : f32 to vector<16x1xf32>
    %292 = arith.addf %288, %291 : vector<16x1xf32>
    %293 = math.rsqrt %292 : vector<16x1xf32>
    %294 = vector.broadcast %293 : vector<16x1xf32> to vector<16x32xf32>
    %295 = arith.mulf %290, %294 : vector<16x32xf32>
    %c1_119 = arith.constant 1 : index
    %c0_120 = arith.constant 0 : index
    %c0_121 = arith.constant 0 : index
    %296 = vector.load %arg12[%c1_119, %c0_120, %c0_121] : memref<2x1x32xf32, #tpu.memory_space<vmem>>, vector<1x1x32xf32>
    %297 = vector.shape_cast %296 : vector<1x1x32xf32> to vector<1x32xf32>
    %298 = vector.broadcast %297 : vector<1x32xf32> to vector<16x32xf32>
    %299 = arith.mulf %295, %298 : vector<16x32xf32>
    %c1_122 = arith.constant 1 : index
    %c0_123 = arith.constant 0 : index
    %c0_124 = arith.constant 0 : index
    %300 = vector.load %arg13[%c1_122, %c0_123, %c0_124] : memref<2x1x32xf32, #tpu.memory_space<vmem>>, vector<1x1x32xf32>
    %301 = vector.shape_cast %300 : vector<1x1x32xf32> to vector<1x32xf32>
    %302 = vector.broadcast %301 : vector<1x32xf32> to vector<16x32xf32>
    %303 = arith.addf %299, %302 : vector<16x32xf32>
    %c0_125 = arith.constant 0 : index
    %c0_126 = arith.constant 0 : index
    %304 = vector.load %arg14[%c0_125, %c0_126] : memref<32x128xf32, #tpu.memory_space<vmem>>, vector<32x128xf32>
    %cst_127 = arith.constant dense<0.000000e+00> : vector<16x128xf32>
    %305 = tpu.matmul %303, %304, %cst_127 {dimension_numbers = #tpu.dot_dimension_numbers<[1], [0], [0], [1], [0, 0, 1, 1], [], []>} : vector<16x32xf32>, vector<32x128xf32>, vector<16x128xf32> -> vector<16x128xf32>
    %c0_128 = arith.constant 0 : index
    %c0_129 = arith.constant 0 : index
    %306 = vector.load %arg15[%c0_128, %c0_129] : memref<1x128xf32, #tpu.memory_space<vmem>>, vector<1x128xf32>
    %307 = vector.broadcast %306 : vector<1x128xf32> to vector<16x128xf32>
    %308 = arith.addf %305, %307 : vector<16x128xf32>
    %309 = vector.shape_cast %308 : vector<16x128xf32> to vector<2x8x128xf32>
    %c0_130 = arith.constant 0 : index
    %c0_131 = arith.constant 0 : index
    %c0_132 = arith.constant 0 : index
    %310 = vector.load %arg16[%c0_130, %c0_131, %c0_132] : memref<2x8x128xf32, #tpu.memory_space<vmem>>, vector<2x8x128xf32>
    tpu.vector_store %arg16[%c0_130, %c0_131, %c0_132], %309 {strides = array<i32>} : memref<2x8x128xf32, #tpu.memory_space<vmem>>, vector<2x8x128xf32>,
    return
  }
}

</mosaic_0001>

<bundles_post_ra>
// kernel: gpt_forward.1
= control target key start
LH: loop header
LB: loop body
LE: loop exit
PB: predicated region body
PF: predicated region fallthrough
CT: control target
= control target key end

     0   :  { %s5743_s0 = inlined_call_operand.vmem [shape: f32[16,32], index: 0, kind: input, shape index: {}]   ;;  %s5744_s1 = inlined_call_operand.vmem [shape: f32[8,8,8], index: 1, kind: input, shape index: {}]   ;;  %s5745_s2 = inlined_call_operand.vmem [shape: f32[2,32,96], index: 2, kind: input, shape index: {}]   ;;  %s5746_s3 = inlined_call_operand.vmem [shape: f32[2,1,96], index: 3, kind: input, shape index: {}]   ;;  %s5747_s4 = inlined_call_operand.vmem [shape: f32[2,32,32], index: 4, kind: input, shape index: {}]   ;;  %s5748_s5 = inlined_call_operand.vmem [shape: f32[2,1,32], index: 5, kind: input, shape index: {}]   ;;  %s5749_s6 = inlined_call_operand.vmem [shape: f32[2,1,32], index: 6, kind: input, shape index: {}]   ;;  %s5750_s7 = inlined_call_operand.vmem [shape: f32[2,1,32], index: 7, kind: input, shape index: {}]   ;;  %s5751_s8 = inlined_call_operand.vmem [shape: f32[2,32,64], index: 8, kind: input, shape index: {}]   ;;  %s5752_s9 = inlined_call_operand.vmem [shape: f32[2,1,64], index: 9, kind: input, shape index: {}]   ;;  %s5753_s10 = inlined_call_operand.vmem [shape: f32[2,64,32], index: 10, kind: input, shape index: {}]   ;;  %s5754_s11 = inlined_call_operand.vmem [shape: f32[2,1,32], index: 11, kind: input, shape index: {}]   ;;  %s5755_s12 = inlined_call_operand.vmem [shape: f32[2,1,32], index: 12, kind: input, shape index: {}]   ;;  %s5756_s13 = inlined_call_operand.vmem [shape: f32[2,1,32], index: 13, kind: input, shape index: {}]   ;;  %s5757_s14 = inlined_call_operand.vmem [shape: f32[32,128], index: 14, kind: input, shape index: {}]   ;;  %s5758_s15 = inlined_call_operand.vmem [shape: f32[1,128], index: 15, kind: input, shape index: {}]   ;;  %s5759_s16 = inlined_call_operand.hbm [shape: f32[2,8,128], index: 16, kind: output, shape index: {}]  }
   0x1   :  { %5761 = sst [smem:[#allocation5_spill]] %s5743_s0 }
   0x2   :  { %v75_v0 = vld [vmem:[%s5745_s2 + $0x18] sm:$0xff]  ;;  %v74_v1 = vld [vmem:[%s5745_s2 + $0x10] sm:$0xff]  ;;  %vm83_vm0 = vcmask 261120   ;;  %s5762_s27 = sld [smem:[#allocation5_spill]]  ;;  %v73_v3 = vld [vmem:[%s5745_s2 + $0x8] sm:$0xff] }
   0x3   :  { %4557 = vmatprep.subr.mxu0 %v75_v0 }
   0x4   :  { %4558 = vmatpush3.msra.mxu0 %v75_v0 }
   0x8   :  { %v5066_v2 = vld [vmem:[%s5762_s27] sm:$0xff] }
   0x9   :  { %4565 = vmatprep.mubr.msk.f32.mxu0 %vm83_vm0, %v5066_v2 }
   0xa   :  { %21 = vsyncpa [#allocation3], 0  ;;  %4559 = vmatprep.subr.mxu0 %v74_v1  ;;  %v72_v4 = vld [vmem:[%s5745_s2] sm:$0xff]  ;;  %v5079_v5 = vld [vmem:[%s5762_s27 + $0x8] sm:$0xff]  ;;  %v4962_v7 = vmov 0.0   ;;  %s4963_s21 = smov 112  }
   0xb   :  { %4560 = vmatpush3.msra.mxu0 %v74_v1  ;;  %4568 = vmatprep.subr.mxu1 %v4962_v7  ;;  %v4296_v8 = vld [vmem:[%s5746_s3] ss:$0 sm:$0xff]  ;;  %s4964_s22 = smov 120   ;;  %vm4965_vm1 = vmmov 0   ;;  %s4966_s23 = smov 104   ;;  %vm181_vm2 = vcmask 64512  }
   0xc   :  { %4561 = vmatprep.subr.mxu0 %v73_v3  ;;  %4570 = vmatprep.mubr.msk.f32.mxu1 %vm4965_vm1, %v4962_v7  ;;  %s4967_s24 = smov 96   ;;  %v5187_v26 = vld [vmem:[%s5744_s1] sm:$0xff]  ;;  %v5193_v29 = vld [vmem:[%s5744_s1 + $0x8] sm:$0xff]  ;;  %v5208_v38 = vld [vmem:[%s5744_s1 + $0x10] sm:$0xff]  ;;  %vm1997_vm11 = vcmask 523264  }
   0xd   :  { %4562 = vmatpush3.msra.mxu0 %v73_v3  ;;  %vm64_vm3 = vcmp.gt.f32.partialorder %v5187_v26, 0.0  ;;  %vm65_vm4 = vcmp.gt.f32.partialorder %v5193_v29, 0.0  ;;  %vm66_vm5 = vcmp.gt.f32.partialorder %v5208_v38, 0.0  ;;  %v5214_v41 = vld [vmem:[%s5744_s1 + $0x18] sm:$0xff]  ;;  %v5219_v42 = vld [vmem:[%s5744_s1 + $0x20] sm:$0xff]  ;;  %v5232_v50 = vld [vmem:[%s5744_s1 + $0x28] sm:$0xff] }
   0xe   :  { %4563 = vmatprep.subr.mxu0 %v72_v4  ;;  %vm67_vm6 = vcmp.gt.f32.partialorder %v5214_v41, 0.0  ;;  %vm68_vm7 = vcmp.gt.f32.partialorder %v5219_v42, 0.0  ;;  %v5237_v51 = vld [vmem:[%s5744_s1 + $0x30] sm:$0xff]  ;;  %vm69_vm8 = vcmp.gt.f32.partialorder %v5232_v50, 0.0  ;;  %v5250_v62 = vld [vmem:[%s5744_s1 + $0x38] sm:$0xff]  ;;  %s4968_s1 = smov 64  }
   0xf   :  { %4564 = vmatpush3.msra.mxu0 %v72_v4  ;;  %vm70_vm9 = vcmp.gt.f32.partialorder %v5237_v51, 0.0  ;;  %vm71_vm10 = vcmp.gt.f32.partialorder %v5250_v62, 0.0 }
  0x10   :  { %4566 = vmatmul.mubr.msk.f32.vlgmr.msra.gmra.mxu0 %vm83_vm0, %v5079_v5  ;;  %4578 = vmatprep.subr.mxu0 %v4962_v7 }
  0x11   :  { %4580 = vmatprep.mubr.msk.f32.mxu0 %vm4965_vm1, %v4962_v7 }
  0xd0   :  { %v4567_v6 = vpop.f32.mrf.mxu0 }
  0xd1   :  { %v5098_v11 = vadd.f32 %v4567_v6, %v4296_v8 }
  0xd2   :  { %v156_v9 = vpop.f32.mrf.mxu0 }
  0xd3   :  { %v5088_v10 = vadd.f32 %v4296_v8, %v156_v9 }
  0xd5   :  { %171 = vrot.lane.b32.xlu1 %v5088_v10, %s4963_s21  ;;  %167 = vrot.lane.b32.xlu0 %v5088_v10, %s4964_s22 }
  0xd9   :  { %173 = vrot.lane.b32.xlu1 %v5098_v11, %s4963_s21  ;;  %169 = vrot.lane.b32.xlu0 %v5098_v11, %s4964_s22 }
  0xdd   :  { %177 = vrot.lane.b32.xlu1 %v5098_v11, %s4966_s23  ;;  %175 = vrot.lane.b32.xlu0 %v5088_v10, %s4966_s23 }
  0xe1   :  { %256 = vrot.lane.b32.xlu1 %v5098_v11, %s4967_s24  ;;  %179 = vrot.lane.b32.xlu0 %v5088_v10, %s4967_s24 }
 0x147   :  { %v5112_v12 = vpop.permute.xlu1 %171  ;;  %v5114_v13 = vpop.permute.xlu0 %167 }
 0x148   :  { %332 = vrot.lane.b32.xlu0 %v5114_v13, %s4967_s24 }
 0x14b   :  { %v5118_v14 = vpop.permute.xlu1 %173  ;;  %v5120_v15 = vpop.permute.xlu0 %169 }
 0x14c   :  { %484 = vrot.lane.b32.xlu0 %v5112_v12, %s4967_s24  ;;  %408 = vrot.lane.b32.xlu1 %v5120_v15, %s4967_s24 }
 0x14f   :  { %v5126_v16 = vpop.permute.xlu0 %175  ;;  %v5132_v17 = vpop.permute.xlu1 %177 }
 0x150   :  { %560 = vrot.lane.b32.xlu1 %v5118_v14, %s4967_s24  ;;  %636 = vrot.lane.b32.xlu0 %v5126_v16, %s4967_s24 }
 0x153   :  { %v180_v18 = vpop.permute.xlu0 %179  ;;  %v257_v19 = vpop.permute.xlu1 %256 }
 0x154   :  { %712 = vrot.lane.b32.xlu1 %v5132_v17, %s4967_s24  ;;  %4569 = vmatpush3.xpose.msk.msra.mxu1 %vm181_vm2, %v180_v18 }
 0x155   :  { %4573 = vmatprep.subr.mxu1 %v4962_v7 }
 0x157   :  { %4571 = vmatmul.mubr.msk.f32.vlgmr.msra.gmra.mxu1 %vm181_vm2, %v5088_v10 }
 0x158   :  { %4574 = vmatpush3.xpose.msk.msra.mxu1 %vm181_vm2, %v257_v19  ;;  %4575 = vmatprep.mubr.msk.f32.mxu1 %vm4965_vm1, %v4962_v7 }
 0x159   :  { %4583 = vmatprep.subr.mxu1 %v4962_v7 }
 0x15b   :  { %4576 = vmatmul.mubr.msk.f32.vlgmr.msra.gmra.mxu1 %vm181_vm2, %v5098_v11 }
 0x15c   :  { %4585 = vmatprep.mubr.msk.f32.mxu1 %vm4965_vm1, %v4962_v7 }
 0x1ba   :  { %v333_v20 = vpop.permute.xlu0 %332 }
 0x1bb   :  { %4579 = vmatpush3.xpose.msk.msra.mxu0 %vm181_vm2, %v333_v20 }
 0x1bc   :  { %4588 = vmatprep.subr.mxu0 %v4962_v7 }
 0x1be   :  { %v409_v21 = vpop.permute.xlu1 %408  ;;  %4581 = vmatmul.mubr.msk.f32.vlgmr.msra.gmra.mxu0 %vm181_vm2, %v5114_v13  ;;  %v485_v22 = vpop.permute.xlu0 %484 }
 0x1bf   :  { %4584 = vmatpush3.xpose.msk.msra.mxu1 %vm181_vm2, %v409_v21  ;;  %4589 = vmatpush3.xpose.msk.msra.mxu0 %vm181_vm2, %v485_v22 }
 0x1c0   :  { %4590 = vmatprep.mubr.msk.f32.mxu0 %vm4965_vm1, %v4962_v7  ;;  %4593 = vmatprep.subr.mxu1 %v4962_v7 }
 0x1c1   :  { %4598 = vmatprep.subr.mxu0 %v4962_v7 }
 0x1c2   :  { %v561_v23 = vpop.permute.xlu1 %560  ;;  %4586 = vmatmul.mubr.msk.f32.vlgmr.msra.gmra.mxu1 %vm181_vm2, %v5120_v15  ;;  %4591 = vmatmul.mubr.msk.f32.vlgmr.msra.gmra.mxu0 %vm181_vm2, %v5112_v12  ;;  %v637_v24 = vpop.permute.xlu0 %636 }
 0x1c3   :  { %4594 = vmatpush3.xpose.msk.msra.mxu1 %vm181_vm2, %v561_v23  ;;  %4599 = vmatpush3.xpose.msk.msra.mxu0 %vm181_vm2, %v637_v24 }
 0x1c4   :  { %4595 = vmatprep.mubr.msk.f32.mxu1 %vm4965_vm1, %v4962_v7  ;;  %4600 = vmatprep.mubr.msk.f32.mxu0 %vm4965_vm1, %v4962_v7 }
 0x1c5   :  { %4603 = vmatprep.subr.mxu1 %v4962_v7  ;;  %4608 = vmatprep.subr.mxu0 %v4962_v7 }
 0x1c6   :  { %v713_v25 = vpop.permute.xlu1 %712  ;;  %4596 = vmatmul.mubr.msk.f32.vlgmr.msra.gmra.mxu1 %vm181_vm2, %v5118_v14  ;;  %4601 = vmatmul.mubr.msk.f32.vlgmr.msra.gmra.mxu0 %vm181_vm2, %v5126_v16 }
 0x1c7   :  { %4604 = vmatpush3.xpose.msk.msra.mxu1 %vm181_vm2, %v713_v25  ;;  %4605 = vmatprep.mubr.msk.f32.mxu1 %vm4965_vm1, %v4962_v7 }
 0x1c8   :  { %4613 = vmatprep.subr.mxu1 %v4962_v7  ;;  %4610 = vmatprep.mubr.msk.f32.mxu0 %vm4965_vm1, %v4962_v7 }
 0x1ca   :  { %4606 = vmatmul.mubr.msk.f32.vlgmr.msra.gmra.mxu1 %vm181_vm2, %v5132_v17 }
 0x1cb   :  { %4615 = vmatprep.mubr.msk.f32.mxu1 %vm4965_vm1, %v4962_v7 }
 0x217   :  { %v252_v27 = vpop.f32.mrf.mxu1 }
 0x218   :  { %v788_v28 = vmul.f32 0.35355338, %v252_v27 }
 0x219   :  { %v4572_v30 = vpop.f32.mrf.mxu1 }
 0x21a   :  { %v5197_v31 = vsel %vm64_vm3, %v788_v28, -10000.0 }
 0x21b   :  { %v328_v32 = vpop.f32.mrf.mxu1  ;;  %v804_v33 = vsel %vm181_vm2, %v5197_v31, -inf }
 0x21c   :  { %v789_v34 = vmul.f32 0.35355338, %v328_v32  ;;  %805 = vmax.xlane.f32.xlu0 %v804_v33 }
 0x21d   :  { %v4577_v35 = vpop.f32.mrf.mxu1 }
 0x21e   :  { %v797_v36 = vsel %vm65_vm4, %v789_v34, -10000.0 }
 0x21f   :  { %v807_v37 = vsel %vm181_vm2, %v797_v36, -inf }
 0x220   :  { %808 = vmax.xlane.f32.xlu1 %v807_v37 }
 0x27e   :  { %v404_v39 = vpop.f32.mrf.mxu0 }
 0x27f   :  { %v790_v40 = vmul.f32 0.35355338, %v404_v39 }
 0x280   :  { %v4582_v43 = vpop.f32.mrf.mxu0 }
 0x281   :  { %v5223_v44 = vsel %vm66_vm5, %v790_v40, -10000.0 }
 0x282   :  { %v480_v45 = vpop.f32.mrf.mxu1  ;;  %v556_v46 = vpop.f32.mrf.mxu0  ;;  %v810_v47 = vsel %vm181_vm2, %v5223_v44, -inf }
 0x283   :  { %v791_v48 = vmul.f32 0.35355338, %v480_v45  ;;  %v792_v49 = vmul.f32 0.35355338, %v556_v46  ;;  %811 = vmax.xlane.f32.xlu0 %v810_v47 }
 0x284   :  { %v4587_v52 = vpop.f32.mrf.mxu1  ;;  %v4592_v53 = vpop.f32.mrf.mxu0 }
 0x285   :  { %v799_v54 = vsel %vm67_vm6, %v791_v48, -10000.0  ;;  %v800_v55 = vsel %vm68_vm7, %v792_v49, -10000.0 }
 0x286   :  { %v632_v56 = vpop.f32.mrf.mxu1  ;;  %v708_v57 = vpop.f32.mrf.mxu0  ;;  %v813_v58 = vsel %vm181_vm2, %v799_v54, -inf  ;;  %v816_v59 = vsel %vm181_vm2, %v800_v55, -inf }
 0x287   :  { %v793_v60 = vmul.f32 0.35355338, %v632_v56  ;;  %v794_v61 = vmul.f32 0.35355338, %v708_v57  ;;  %814 = vmax.xlane.f32.xlu0 %v813_v58  ;;  %817 = vmax.xlane.f32.xlu1 %v816_v59 }
 0x288   :  { %v4597_v63 = vpop.f32.mrf.mxu1  ;;  %v4602_v0 = vpop.f32.mrf.mxu0 }
 0x289   :  { %v801_v1 = vsel %vm69_vm8, %v793_v60, -10000.0  ;;  %v802_v3 = vsel %vm70_vm9, %v794_v61, -10000.0 }
 0x28a   :  { %v784_v4 = vpop.f32.mrf.mxu1  ;;  %v819_v6 = vsel %vm181_vm2, %v801_v1, -inf  ;;  %v822_v8 = vsel %vm181_vm2, %v802_v3, -inf }
 0x28b   :  { %v795_v9 = vmul.f32 0.35355338, %v784_v4  ;;  %820 = vmax.xlane.f32.xlu0 %v819_v6  ;;  %823 = vmax.xlane.f32.xlu1 %v822_v8 }
 0x28c   :  { %v4607_v18 = vpop.f32.mrf.mxu1 }
 0x28d   :  { %v803_v19 = vsel %vm71_vm10, %v795_v9, -10000.0 }
 0x28e   :  { %v825_v20 = vsel %vm181_vm2, %v803_v19, -inf }
 0x28f   :  { %826 = vmax.xlane.f32.xlu0 %v825_v20 }
 0x29c   :  { %892 = vrot.lane.b32.xlu1 %v5088_v10, %s4968_s1 }
 0x2a0   :  { %1044 = vrot.lane.b32.xlu1 %v5114_v13, %s4968_s1 }
 0x2a4   :  { %1120 = vrot.lane.b32.xlu1 %v5120_v15, %s4968_s1 }
 0x2a5   :  { %968 = vrot.lane.b32.xlu0 %v5098_v11, %s4968_s1  ;;  %v806_v23 = vpop.xlane.xlu0 %805 }
 0x2a6   :  { %v828_v10 = vsub.f32 %v5197_v31, %v806_v23 }
 0x2a8   :  { %1272 = vrot.lane.b32.xlu1 %v5118_v14, %s4968_s1  ;;  %v836_v25 = vmul.f32 1.442695, %v828_v10 }
 0x2a9   :  { %1196 = vrot.lane.b32.xlu0 %v5112_v12, %s4968_s1  ;;  %v809_v21 = vpop.xlane.xlu1 %808 }
 0x2aa   :  { %v829_v22 = vsub.f32 %v797_v36, %v809_v21 }
 0x2ac   :  { %v838_v24 = vmul.f32 1.442695, %v829_v22 }
 0x2ae   :  { %4860 = vpow2.f32 %v838_v24 }
 0x2af   :  { %4862 = vpow2.f32 %v836_v25 }
 0x2bb   :  { %v5275_v13 = vpop.eup %4860 }
 0x2bc   :  { %v855_v11 = vsel %vm181_vm2, %v5275_v13, 0.0  ;;  %v5279_v15 = vpop.eup %4862 }
 0x2bd   :  { %v852_v12 = vsel %vm181_vm2, %v5279_v15, 0.0 }
 0x2c8   :  { %856 = vadd.xlane.f32.xlu0 %v855_v11 }
 0x2cc   :  { %853 = vadd.xlane.f32.xlu1 %v852_v12 }
 0x30c   :  { %v812_v14 = vpop.xlane.xlu0 %811 }
 0x30d   :  { %v830_v27 = vsub.f32 %v5223_v44, %v812_v14 }
 0x30f   :  { %v840_v28 = vmul.f32 1.442695, %v830_v27 }
 0x310   :  { %v818_v30 = vpop.xlane.xlu1 %817  ;;  %v815_v31 = vpop.xlane.xlu0 %814 }
 0x311   :  { %4864 = vpow2.f32 %v840_v28  ;;  %v832_v32 = vsub.f32 %v800_v55, %v818_v30  ;;  %v831_v33 = vsub.f32 %v799_v54, %v815_v31 }
 0x313   :  { %v844_v34 = vmul.f32 1.442695, %v832_v32  ;;  %v842_v35 = vmul.f32 1.442695, %v831_v33 }
 0x314   :  { %v824_v36 = vpop.xlane.xlu1 %823  ;;  %v821_v37 = vpop.xlane.xlu0 %820 }
 0x315   :  { %4866 = vpow2.f32 %v844_v34  ;;  %v834_v39 = vsub.f32 %v802_v3, %v824_v36  ;;  %v833_v40 = vsub.f32 %v801_v1, %v821_v37  ;;  %v1501_v36 = vld [vmem:[%s5747_s4 + $0x8] sm:$0xff]  ;;  %v1502_v37 = vld [vmem:[%s5747_s4 + $0x10] sm:$0xff] }
 0x316   :  { %4868 = vpow2.f32 %v842_v35 }
 0x317   :  { %v848_v43 = vmul.f32 1.442695, %v834_v39  ;;  %v846_v45 = vmul.f32 1.442695, %v833_v40  ;;  %v1500_v39 = vld [vmem:[%s5747_s4] sm:$0xff]  ;;  %v1503_v40 = vld [vmem:[%s5747_s4 + $0x18] sm:$0xff] }
 0x318   :  { %v893_v46 = vpop.permute.xlu1 %892  ;;  %v827_v47 = vpop.xlane.xlu0 %826 }
 0x319   :  { %4870 = vpow2.f32 %v848_v43  ;;  %v835_v44 = vsub.f32 %v803_v19, %v827_v47  ;;  %4609 = vmatpush3.msra.mxu0 %v893_v46 }
 0x31a   :  { %4872 = vpow2.f32 %v846_v45  ;;  %4618 = vmatprep.subr.mxu0 %v4962_v7 }
 0x31b   :  { %v850_v48 = vmul.f32 1.442695, %v835_v44 }
 0x31c   :  { %v969_v49 = vpop.permute.xlu0 %968  ;;  %v1045_v1 = vpop.permute.xlu1 %1044 }
 0x31d   :  { %4874 = vpow2.f32 %v850_v48  ;;  %4614 = vmatpush3.msra.mxu1 %v969_v49 }
 0x31e   :  { %v4865_v52 = vpop.eup %4864  ;;  %4623 = vmatprep.subr.mxu1 %v4962_v7 }
 0x31f   :  { %v858_v53 = vsel %vm181_vm2, %v4865_v52, 0.0 }
 0x320   :  { %859 = vadd.xlane.f32.xlu1 %v858_v53  ;;  %v1121_v3 = vpop.permute.xlu1 %1120  ;;  %v1197_v4 = vpop.permute.xlu0 %1196 }
 0x322   :  { %v4867_v54 = vpop.eup %4866 }
 0x323   :  { %v4869_v55 = vpop.eup %4868  ;;  %v864_v56 = vsel %vm181_vm2, %v4867_v54, 0.0 }
 0x324   :  { %865 = vadd.xlane.f32.xlu1 %v864_v56  ;;  %v861_v57 = vsel %vm181_vm2, %v4869_v55, 0.0  ;;  %v1273_v6 = vpop.permute.xlu1 %1272 }
 0x325   :  { %862 = vadd.xlane.f32.xlu0 %v861_v57 }
 0x326   :  { %v4871_v58 = vpop.eup %4870 }
 0x327   :  { %v5289_v59 = vpop.eup %4872  ;;  %v870_v60 = vsel %vm181_vm2, %v4871_v58, 0.0 }
 0x328   :  { %871 = vadd.xlane.f32.xlu1 %v870_v60  ;;  %v867_v61 = vsel %vm181_vm2, %v5289_v59, 0.0 }
 0x329   :  { %868 = vadd.xlane.f32.xlu0 %v867_v61 }
 0x32a   :  { %v5294_v63 = vpop.eup %4874 }
 0x32b   :  { %v873_v0 = vsel %vm181_vm2, %v5294_v63, 0.0 }
 0x32d   :  { %874 = vadd.xlane.f32.xlu0 %v873_v0 }
 0x339   :  { %1424 = vrot.lane.b32.xlu1 %v5132_v17, %s4968_s1 }
 0x343   :  { %1348 = vrot.lane.b32.xlu0 %v5126_v16, %s4968_s1 }
 0x351   :  { %v857_v8 = vpop.xlane.xlu0 %856 }
 0x352   :  { %4876 = vrcp.f32 %v857_v8 }
 0x355   :  { %v854_v9 = vpop.xlane.xlu1 %853 }
 0x356   :  { %4878 = vrcp.f32 %v854_v9 }
 0x35f   :  { %v4877_v18 = vpop.eup %4876 }
 0x360   :  { %v885_v19 = vmul.f32 %v4877_v18, %v5275_v13 }
 0x362   :  { %4616 = vmatmul.mubr.msk.f32.vlgmr.msra.gmra.mxu1 %vm181_vm2, %v885_v19  ;;  %v4331_v19 = vld [vmem:[%s5748_s5] ss:$0 sm:$0xff] }
 0x363   :  { %v4879_v20 = vpop.eup %4878  ;;  %4624 = vmatpush3.msra.mxu1 %v1121_v3  ;;  %4625 = vmatprep.mubr.msk.f32.mxu1 %vm4965_vm1, %v4962_v7 }
 0x364   :  { %v884_v16 = vmul.f32 %v4879_v20, %v5279_v15  ;;  %4633 = vmatprep.subr.mxu1 %v4962_v7 }
 0x366   :  { %4611 = vmatmul.mubr.msk.f32.vlgmr.msra.gmra.mxu0 %vm181_vm2, %v884_v16 }
 0x367   :  { %4619 = vmatpush3.msra.mxu0 %v1045_v1  ;;  %4620 = vmatprep.mubr.msk.f32.mxu0 %vm4965_vm1, %v4962_v7 }
 0x368   :  { %4628 = vmatprep.subr.mxu0 %v4962_v7 }
 0x3a9   :  { %v860_v17 = vpop.xlane.xlu1 %859 }
 0x3aa   :  { %4880 = vrcp.f32 %v860_v17 }
 0x3ad   :  { %v866_v21 = vpop.xlane.xlu1 %865 }
 0x3ae   :  { %4882 = vrcp.f32 %v866_v21  ;;  %v863_v22 = vpop.xlane.xlu0 %862 }
 0x3af   :  { %4884 = vrcp.f32 %v863_v22 }
 0x3b1   :  { %v872_v23 = vpop.xlane.xlu1 %871 }
 0x3b2   :  { %4886 = vrcp.f32 %v872_v23  ;;  %v869_v10 = vpop.xlane.xlu0 %868 }
 0x3b3   :  { %4888 = vrcp.f32 %v869_v10 }
 0x3b5   :  { %v1425_v33 = vpop.permute.xlu1 %1424 }
 0x3b6   :  { %v875_v24 = vpop.xlane.xlu0 %874 }
 0x3b7   :  { %v4881_v25 = vpop.eup %4880  ;;  %4890 = vrcp.f32 %v875_v24 }
 0x3b8   :  { %v886_v13 = vmul.f32 %v4881_v25, %v4865_v52 }
 0x3ba   :  { %4621 = vmatmul.mubr.msk.f32.vlgmr.msra.gmra.mxu0 %vm181_vm2, %v886_v13  ;;  %v1349_v27 = vpop.permute.xlu0 %1348 }
 0x3bb   :  { %v4883_v11 = vpop.eup %4882  ;;  %4629 = vmatpush3.msra.mxu0 %v1197_v4  ;;  %4630 = vmatprep.mubr.msk.f32.mxu0 %vm4965_vm1, %v4962_v7 }
 0x3bc   :  { %v4885_v15 = vpop.eup %4884  ;;  %4638 = vmatprep.subr.mxu0 %v4962_v7  ;;  %v888_v12 = vmul.f32 %v4883_v11, %v4867_v54 }
 0x3bd   :  { %v887_v14 = vmul.f32 %v4885_v15, %v4869_v55 }
 0x3be   :  { %4631 = vmatmul.mubr.msk.f32.vlgmr.msra.gmra.mxu0 %vm181_vm2, %v888_v12 }
 0x3bf   :  { %v4887_v28 = vpop.eup %4886  ;;  %4626 = vmatmul.mubr.msk.f32.vlgmr.msra.gmra.mxu1 %vm181_vm2, %v887_v14  ;;  %4639 = vmatpush3.msra.mxu0 %v1349_v27 }
 0x3c0   :  { %v4889_v30 = vpop.eup %4888  ;;  %4634 = vmatpush3.msra.mxu1 %v1273_v6  ;;  %4635 = vmatprep.mubr.msk.f32.mxu1 %vm4965_vm1, %v4962_v7  ;;  %v890_v31 = vmul.f32 %v4887_v28, %v4871_v58 }
 0x3c1   :  { %4640 = vmatprep.mubr.msk.f32.mxu0 %vm4965_vm1, %v4962_v7  ;;  %4643 = vmatprep.subr.mxu1 %v4962_v7  ;;  %v889_v32 = vmul.f32 %v4889_v30, %v5289_v59 }
 0x3c2   :  { %4641 = vmatmul.mubr.msk.f32.vlgmr.msra.gmra.mxu0 %vm181_vm2, %v890_v31  ;;  %4648 = vmatprep.subr.mxu0 %v1501_v36 }
 0x3c3   :  { %4636 = vmatmul.mubr.msk.f32.vlgmr.msra.gmra.mxu1 %vm181_vm2, %v889_v32  ;;  %4649 = vmatpush3.msra.mxu0 %v1501_v36  ;;  %v1989_v36 = vld [vmem:[%s5753_s10 + $0x38] sm:$0xff] }
 0x3c4   :  { %v4891_v34 = vpop.eup %4890  ;;  %4644 = vmatpush3.msra.mxu1 %v1425_v33  ;;  %4645 = vmatprep.mubr.msk.f32.mxu1 %vm4965_vm1, %v4962_v7  ;;  %v1890_v33 = vld [vmem:[%s5751_s8 + $0x10] sm:$0xff] }
 0x3c5   :  { %v891_v35 = vmul.f32 %v4891_v34, %v5294_v63  ;;  %4653 = vmatprep.subr.mxu1 %v1502_v37  ;;  %4658 = vmatprep.subr.mxu0 %v1503_v40  ;;  %v1889_v34 = vld [vmem:[%s5751_s8 + $0x8] sm:$0xff] }
 0x3c7   :  { %4646 = vmatmul.mubr.msk.f32.vlgmr.msra.gmra.mxu1 %vm181_vm2, %v891_v35  ;;  %v1888_v35 = vld [vmem:[%s5751_s8] sm:$0xff] }
 0x3c8   :  { %4654 = vmatpush3.msra.mxu1 %v1502_v37  ;;  %v1988_v37 = vld [vmem:[%s5753_s10 + $0x30] sm:$0xff] }
 0x3c9   :  { %4663 = vmatprep.subr.mxu1 %v1500_v39 }
 0x422   :  { %v1040_v43 = vpop.f32.mrf.mxu1 }
 0x424   :  { %v4617_v45 = vpop.f32.mrf.mxu1 }
 0x426   :  { %v964_v46 = vpop.f32.mrf.mxu0 }
 0x428   :  { %v4612_v47 = vpop.f32.mrf.mxu0 }
 0x47a   :  { %v1116_v44 = vpop.f32.mrf.mxu0 }
 0x47b   :  { %4650 = vmatprep.mubr.msk.f32.mxu0 %vm181_vm2, %v1116_v44 }
 0x47c   :  { %v4622_v48 = vpop.f32.mrf.mxu0 }
 0x47e   :  { %v1268_v49 = vpop.f32.mrf.mxu0 }
 0x47f   :  { %v1192_v52 = vpop.f32.mrf.mxu1  ;;  %4655 = vmatprep.mubr.msk.f32.mxu1 %vm181_vm2, %v1268_v49 }
 0x480   :  { %4651 = vmatmul.mubr.msk.f32.vlgmr.msra.gmra.mxu0 %vm181_vm2, %v1192_v52  ;;  %v4632_v53 = vpop.f32.mrf.mxu0  ;;  %v4332_v52 = vld [vmem:[%s5749_s6] ss:$0 sm:$0xff] }
 0x481   :  { %v4627_v54 = vpop.f32.mrf.mxu1  ;;  %4659 = vmatpush3.msra.mxu0 %v1503_v40  ;;  %v1986_v40 = vld [vmem:[%s5753_s10 + $0x20] sm:$0xff] }
 0x482   :  { %v1420_v55 = vpop.f32.mrf.mxu0  ;;  %v4333_v54 = vld [vmem:[%s5750_s7] ss:$0 sm:$0xff] }
 0x483   :  { %v1344_v56 = vpop.f32.mrf.mxu1  ;;  %4660 = vmatprep.mubr.msk.f32.mxu0 %vm181_vm2, %v1420_v55 }
 0x484   :  { %4656 = vmatmul.mubr.msk.f32.vlgmr.msra.gmra.mxu1 %vm181_vm2, %v1344_v56  ;;  %v4642_v57 = vpop.f32.mrf.mxu0 }
 0x485   :  { %v4637_v58 = vpop.f32.mrf.mxu1  ;;  %4664 = vmatpush3.msra.mxu1 %v1500_v39  ;;  %4665 = vmatprep.mubr.msk.f32.mxu1 %vm181_vm2, %v964_v46  ;;  %v1987_v39 = vld [vmem:[%s5753_s10 + $0x28] sm:$0xff] }
 0x486   :  { %4679 = vmatprep.subr.mxu1 %v1989_v36 }
 0x487   :  { %v1496_v59 = vpop.f32.mrf.mxu1 }
 0x488   :  { %4661 = vmatmul.mubr.msk.f32.vlgmr.msra.gmra.mxu0 %vm181_vm2, %v1496_v59  ;;  %4666 = vmatmul.mubr.msk.f32.vlgmr.msra.gmra.mxu1 %vm181_vm2, %v1040_v43 }
 0x489   :  { %v4647_v60 = vpop.f32.mrf.mxu1  ;;  %4680 = vmatpush3.msra.mxu1 %v1989_v36 }
 0x48a   :  { %4681 = vmatprep.subr.mxu1 %v1988_v37 }
 0x48b   :  { %4682 = vmatpush3.msra.mxu1 %v1988_v37 }
 0x48c   :  { %4683 = vmatprep.subr.mxu1 %v1987_v39 }
 0x48d   :  { %4684 = vmatpush3.msra.mxu1 %v1987_v39 }
 0x48e   :  { %4685 = vmatprep.subr.mxu1 %v1986_v40 }
 0x48f   :  { %4686 = vmatpush3.msra.mxu1 %v1986_v40 }
 0x540   :  { %v4652_v61 = vpop.f32.mrf.mxu0 }
 0x542   :  { %v1576_v1 = vpop.f32.mrf.mxu0 }
 0x544   :  { %v4657_v63 = vpop.f32.mrf.mxu1 }
 0x546   :  { %v1657_v0 = vpop.f32.mrf.mxu1 }
 0x548   :  { %v4667_v3 = vpop.f32.mrf.mxu1  ;;  %v4662_v6 = vpop.f32.mrf.mxu0 }
 0x549   :  { %v1825_v4 = vadd.f32 %v4667_v3, %v4652_v61  ;;  %v1985_v61 = vld [vmem:[%s5753_s10 + $0x18] sm:$0xff]  ;;  %v4334_v3 = vld [vmem:[%s5752_s9] ss:$0 sm:$0xff] }
 0x54a   :  { %v1819_v8 = vpop.f32.mrf.mxu1  ;;  %v1738_v17 = vpop.f32.mrf.mxu0  ;;  %4687 = vmatprep.subr.mxu1 %v1985_v61 }
 0x54b   :  { %v1829_v9 = vadd.f32 %v4657_v63, %v1825_v4  ;;  %v1820_v18 = vadd.f32 %v1819_v8, %v1576_v1  ;;  %4688 = vmatpush3.msra.mxu1 %v1985_v61  ;;  %v1984_v63 = vld [vmem:[%s5753_s10 + $0x10] sm:$0xff]  ;;  %v1982_v1 = vld [vmem:[%s5753_s10] sm:$0xff] }
 0x54c   :  { %4689 = vmatprep.subr.mxu1 %v1984_v63 }
 0x54d   :  { %v1831_v20 = vadd.f32 %v4662_v6, %v1829_v9  ;;  %v1828_v16 = vadd.f32 %v1820_v18, %v1657_v0  ;;  %4690 = vmatpush3.msra.mxu1 %v1984_v63  ;;  %v1983_v0 = vld [vmem:[%s5753_s10 + $0x8] sm:$0xff] }
 0x54e   :  { %4691 = vmatprep.subr.mxu1 %v1983_v0 }
 0x54f   :  { %v1830_v21 = vadd.f32 %v1828_v16, %v1738_v17  ;;  %v1840_v22 = vadd.f32 %v4331_v19, %v1831_v20  ;;  %4692 = vmatpush3.msra.mxu1 %v1983_v0  ;;  %v4337_v20 = vld [vmem:[%s5754_s11] ss:$0 sm:$0xff] }
 0x550   :  { %4693 = vmatprep.subr.mxu1 %v1982_v1 }
 0x551   :  { %v1842_v23 = vadd.f32 %v1840_v22, %v5079_v5  ;;  %v1839_v10 = vadd.f32 %v4331_v19, %v1830_v21  ;;  %4694 = vmatpush3.msra.mxu1 %v1982_v1 }
 0x552   :  { %4714 = vmatprep.subr.mxu1 %v4962_v7 }
 0x553   :  { %v1846_v24 = vsel %vm83_vm0, %v1842_v23, 0.0  ;;  %v1841_v25 = vadd.f32 %v1839_v10, %v5066_v2  ;;  %v1891_v2 = vld [vmem:[%s5751_s8 + $0x18] sm:$0xff] }
 0x554   :  { %1847 = vadd.xlane.f32.xlu1 %v1846_v24  ;;  %4668 = vmatprep.subr.mxu0 %v1891_v2 }
 0x555   :  { %v1843_v13 = vsel %vm83_vm0, %v1841_v25, 0.0  ;;  %4669 = vmatpush3.msra.mxu0 %v1891_v2  ;;  %v4344_v2 = vld [vmem:[%s5745_s2 + $0x30] sm:$0xff] }
 0x556   :  { %1844 = vadd.xlane.f32.xlu0 %v1843_v13  ;;  %4670 = vmatprep.subr.mxu0 %v1890_v33 }
 0x557   :  { %4671 = vmatpush3.msra.mxu0 %v1890_v33  ;;  %v4343_v33 = vld [vmem:[%s5745_s2 + $0x28] sm:$0xff] }
 0x558   :  { %4672 = vmatprep.subr.mxu0 %v1889_v34 }
 0x559   :  { %4673 = vmatpush3.msra.mxu0 %v1889_v34  ;;  %v4342_v34 = vld [vmem:[%s5745_s2 + $0x20] sm:$0xff] }
 0x55a   :  { %4674 = vmatprep.subr.mxu0 %v1888_v35 }
 0x55b   :  { %4675 = vmatpush3.msra.mxu0 %v1888_v35 }
 0x5dd   :  { %v1848_v11 = vpop.xlane.xlu1 %1847 }
 0x5de   :  { %v1851_v15 = vmul.f32 0.03125, %v1848_v11 }
 0x5df   :  { %v1845_v12 = vpop.xlane.xlu0 %1844 }
 0x5e0   :  { %v1850_v14 = vmul.f32 0.03125, %v1845_v12  ;;  %v1853_v27 = vsub.f32 %v1842_v23, %v1851_v15 }
 0x5e2   :  { %v1852_v28 = vsub.f32 %v1841_v25, %v1850_v14  ;;  %v1855_v32 = vmul.f32 %v1853_v27, %v1853_v27 }
 0x5e4   :  { %v1854_v30 = vmul.f32 %v1852_v28, %v1852_v28  ;;  %v1859_v5 = vsel %vm83_vm0, %v1855_v32, 0.0 }
 0x5e6   :  { %v1856_v31 = vsel %vm83_vm0, %v1854_v30, 0.0 }
 0x5e7   :  { %1857 = vadd.xlane.f32.xlu0 %v1856_v31 }
 0x5eb   :  { %1860 = vadd.xlane.f32.xlu0 %v1859_v5  ;;  %v4345_v5 = vld [vmem:[%s5745_s2 + $0x38] sm:$0xff] }
 0x5ec   :  { %4698 = vmatprep.subr.mxu0 %v4345_v5 }
 0x670   :  { %v1858_v43 = vpop.xlane.xlu0 %1857 }
 0x671   :  { %v1862_v45 = vmul.f32 0.03125, %v1858_v43 }
 0x673   :  { %v1864_v46 = vadd.f32 1e-12, %v1862_v45 }
 0x674   :  { %v1861_v47 = vpop.xlane.xlu0 %1860 }
 0x675   :  { %4892 = vrsqrt.f32 %v1864_v46  ;;  %v1863_v44 = vmul.f32 0.03125, %v1861_v47  ;;  %v4340_v47 = vld [vmem:[%s5755_s12] ss:$0 sm:$0xff] }
 0x677   :  { %v1865_v48 = vadd.f32 1e-12, %v1863_v44 }
 0x679   :  { %4894 = vrsqrt.f32 %v1865_v48 }
 0x682   :  { %v4893_v49 = vpop.eup %4892 }
 0x683   :  { %v1868_v53 = vmul.f32 %v4893_v49, %v1852_v28 }
 0x685   :  { %v1877_v55 = vmul.f32 %v4332_v52, %v1868_v53  ;;  %v4341_v53 = vld [vmem:[%s5756_s13] ss:$0 sm:$0xff] }
 0x686   :  { %v4895_v56 = vpop.eup %4894 }
 0x687   :  { %v1869_v57 = vmul.f32 %v4895_v56, %v1853_v27  ;;  %v1886_v58 = vadd.f32 %v4333_v54, %v1877_v55  ;;  %v4347_v56 = vld [vmem:[%s5746_s3 + $0x1] ss:$0 sm:$0xff] }
 0x689   :  { %v1878_v59 = vmul.f32 %v4332_v52, %v1869_v57  ;;  %4676 = vmatprep.mubr.msk.f32.mxu0 %vm83_vm0, %v1886_v58 }
 0x68b   :  { %v1887_v60 = vadd.f32 %v4333_v54, %v1878_v59 }
 0x68d   :  { %4677 = vmatmul.mubr.msk.f32.vlgmr.msra.gmra.mxu0 %vm83_vm0, %v1887_v60 }
 0x68e   :  { %4699 = vmatpush3.msra.mxu0 %v4345_v5 }
 0x68f   :  { %4700 = vmatprep.subr.mxu0 %v4344_v2 }
 0x690   :  { %4701 = vmatpush3.msra.mxu0 %v4344_v2 }
 0x691   :  { %4702 = vmatprep.subr.mxu0 %v4343_v33 }
 0x692   :  { %4703 = vmatpush3.msra.mxu0 %v4343_v33 }
 0x693   :  { %4704 = vmatprep.subr.mxu0 %v4342_v34 }
 0x694   :  { %4705 = vmatpush3.msra.mxu0 %v4342_v34 }
 0x695   :  { %4709 = vmatprep.subr.mxu0 %v4962_v7 }
 0x74d   :  { %v4678_v4 = vpop.f32.mrf.mxu0 }
 0x74e   :  { %v1977_v6 = vadd.f32 %v4678_v4, %v4334_v3 }
 0x74f   :  { %v1971_v8 = vpop.f32.mrf.mxu0 }
 0x750   :  { %v1972_v9 = vadd.f32 %v4334_v3, %v1971_v8  ;;  %v1981_v19 = vmax.f32 %v1977_v6, 0.0 }
 0x752   :  { %v1980_v18 = vmax.f32 %v1972_v9, 0.0 }
 0x754   :  { %4695 = vmatprep.mubr.msk.f32.mxu1 %vm1997_vm11, %v1980_v18 }
 0x755   :  { %4696 = vmatmul.mubr.msk.f32.vlgmr.msra.gmra.mxu1 %vm1997_vm11, %v1981_v19 }
 0x756   :  { %4716 = vmatprep.mubr.msk.f32.mxu1 %vm4965_vm1, %v4962_v7 }
 0x815   :  { %v4697_v16 = vpop.f32.mrf.mxu1 }
 0x816   :  { %v2076_v17 = vadd.f32 %v4697_v16, %v4337_v20 }
 0x817   :  { %v2070_v21 = vpop.f32.mrf.mxu1 }
 0x818   :  { %v2071_v22 = vadd.f32 %v4337_v20, %v2070_v21  ;;  %v2080_v23 = vadd.f32 %v2076_v17, %v1887_v60 }
 0x81a   :  { %v2084_v10 = vsel %vm83_vm0, %v2080_v23, 0.0  ;;  %v2079_v24 = vadd.f32 %v2071_v22, %v1886_v58 }
 0x81b   :  { %2085 = vadd.xlane.f32.xlu0 %v2084_v10 }
 0x81c   :  { %v2081_v25 = vsel %vm83_vm0, %v2079_v24, 0.0 }
 0x81d   :  { %2082 = vadd.xlane.f32.xlu1 %v2081_v25 }
 0x8a4   :  { %v2086_v13 = vpop.xlane.xlu0 %2085 }
 0x8a5   :  { %v2088_v11 = vmul.f32 0.03125, %v2086_v13 }
 0x8a6   :  { %v2083_v15 = vpop.xlane.xlu1 %2082 }
 0x8a7   :  { %v2090_v12 = vsub.f32 %v2080_v23, %v2088_v11  ;;  %v2087_v14 = vmul.f32 0.03125, %v2083_v15 }
 0x8a9   :  { %v2089_v27 = vsub.f32 %v2079_v24, %v2087_v14  ;;  %v2092_v28 = vmul.f32 %v2090_v12, %v2090_v12 }
 0x8ab   :  { %v2096_v30 = vsel %vm83_vm0, %v2092_v28, 0.0  ;;  %v2091_v31 = vmul.f32 %v2089_v27, %v2089_v27 }
 0x8ac   :  { %2097 = vadd.xlane.f32.xlu0 %v2096_v30 }
 0x8ad   :  { %v2093_v32 = vsel %vm83_vm0, %v2091_v31, 0.0 }
 0x8ae   :  { %2094 = vadd.xlane.f32.xlu1 %v2093_v32 }
 0x935   :  { %v2098_v35 = vpop.xlane.xlu0 %2097 }
 0x936   :  { %v2100_v36 = vmul.f32 0.03125, %v2098_v35 }
 0x937   :  { %v2095_v37 = vpop.xlane.xlu1 %2094 }
 0x938   :  { %v2102_v39 = vadd.f32 1e-12, %v2100_v36  ;;  %v2099_v40 = vmul.f32 0.03125, %v2095_v37 }
 0x93a   :  { %4896 = vrsqrt.f32 %v2102_v39  ;;  %v2101_v43 = vadd.f32 1e-12, %v2099_v40 }
 0x93c   :  { %4898 = vrsqrt.f32 %v2101_v43 }
 0x947   :  { %v4897_v45 = vpop.eup %4896 }
 0x948   :  { %v2106_v46 = vmul.f32 %v4897_v45, %v2090_v12 }
 0x949   :  { %v4899_v44 = vpop.eup %4898 }
 0x94a   :  { %v2105_v48 = vmul.f32 %v4899_v44, %v2089_v27  ;;  %v2115_v49 = vmul.f32 %v4340_v47, %v2106_v46 }
 0x94c   :  { %v2114_v52 = vmul.f32 %v4340_v47, %v2105_v48  ;;  %v5439_v55 = vadd.f32 %v4341_v53, %v2115_v49 }
 0x94e   :  { %v5437_v54 = vadd.f32 %v4341_v53, %v2114_v52 }
 0x950   :  { %4706 = vmatprep.mubr.msk.f32.mxu0 %vm83_vm0, %v5437_v54 }
 0x951   :  { %4707 = vmatmul.mubr.msk.f32.vlgmr.msra.gmra.mxu0 %vm83_vm0, %v5439_v55 }
 0x952   :  { %4711 = vmatprep.mubr.msk.f32.mxu0 %vm4965_vm1, %v4962_v7 }
 0xa11   :  { %v4708_v57 = vpop.f32.mrf.mxu0 }
 0xa12   :  { %v5450_v58 = vadd.f32 %v4708_v57, %v4347_v56 }
 0xa13   :  { %v2210_v59 = vpop.f32.mrf.mxu0 }
 0xa14   :  { %v5452_v60 = vadd.f32 %v4347_v56, %v2210_v59  ;;  %2223 = vrot.lane.b32.xlu0 %v5450_v58, %s4964_s22 }
 0xa16   :  { %2221 = vrot.lane.b32.xlu1 %v5452_v60, %s4964_s22 }
 0xa18   :  { %2229 = vrot.lane.b32.xlu0 %v5452_v60, %s4966_s23 }
 0xa1a   :  { %2225 = vrot.lane.b32.xlu1 %v5452_v60, %s4963_s21 }
 0xa1c   :  { %2233 = vrot.lane.b32.xlu0 %v5452_v60, %s4967_s24 }
 0xa1e   :  { %2227 = vrot.lane.b32.xlu1 %v5450_v58, %s4963_s21 }
 0xa22   :  { %2231 = vrot.lane.b32.xlu1 %v5450_v58, %s4966_s23 }
 0xa26   :  { %2309 = vrot.lane.b32.xlu1 %v5450_v58, %s4967_s24 }
 0xa86   :  { %v5470_v61 = vpop.permute.xlu0 %2223 }
 0xa87   :  { %2461 = vrot.lane.b32.xlu1 %v5470_v61, %s4967_s24 }
 0xa88   :  { %v5474_v63 = vpop.permute.xlu1 %2221 }
 0xa89   :  { %2385 = vrot.lane.b32.xlu0 %v5474_v63, %s4967_s24 }
 0xa8a   :  { %v5478_v0 = vpop.permute.xlu0 %2229 }
 0xa8c   :  { %v5480_v1 = vpop.permute.xlu1 %2225 }
 0xa8d   :  { %2537 = vrot.lane.b32.xlu0 %v5480_v1, %s4967_s24 }
 0xa8e   :  { %v2234_v3 = vpop.permute.xlu0 %2233 }
 0xa8f   :  { %4710 = vmatpush3.xpose.msk.msra.mxu0 %vm181_vm2, %v2234_v3 }
 0xa90   :  { %v5485_v4 = vpop.permute.xlu1 %2227  ;;  %4719 = vmatprep.subr.mxu0 %v4962_v7 }
 0xa91   :  { %2689 = vrot.lane.b32.xlu0 %v5478_v0, %s4967_s24  ;;  %2613 = vrot.lane.b32.xlu1 %v5485_v4, %s4967_s24 }
 0xa92   :  { %4712 = vmatmul.mubr.msk.f32.vlgmr.msra.gmra.mxu0 %vm181_vm2, %v5452_v60 }
 0xa93   :  { %4721 = vmatprep.mubr.msk.f32.mxu0 %vm4965_vm1, %v4962_v7 }
 0xa94   :  { %v5496_v6 = vpop.permute.xlu1 %2231 }
 0xa95   :  { %2765 = vrot.lane.b32.xlu1 %v5496_v6, %s4967_s24 }
 0xa98   :  { %v2310_v8 = vpop.permute.xlu1 %2309 }
 0xa99   :  { %4715 = vmatpush3.xpose.msk.msra.mxu1 %vm181_vm2, %v2310_v8 }
 0xa9a   :  { %4724 = vmatprep.subr.mxu1 %v4962_v7 }
 0xa9c   :  { %4717 = vmatmul.mubr.msk.f32.vlgmr.msra.gmra.mxu1 %vm181_vm2, %v5450_v58 }
 0xa9d   :  { %4726 = vmatprep.mubr.msk.f32.mxu1 %vm4965_vm1, %v4962_v7 }
 0xaf9   :  { %v2462_v9 = vpop.permute.xlu1 %2461 }
 0xafa   :  { %4725 = vmatpush3.xpose.msk.msra.mxu1 %vm181_vm2, %v2462_v9 }
 0xafb   :  { %v2386_v18 = vpop.permute.xlu0 %2385  ;;  %4734 = vmatprep.subr.mxu1 %v4962_v7 }
 0xafc   :  { %4720 = vmatpush3.xpose.msk.msra.mxu0 %vm181_vm2, %v2386_v18 }
 0xafd   :  { %4727 = vmatmul.mubr.msk.f32.vlgmr.msra.gmra.mxu1 %vm181_vm2, %v5470_v61  ;;  %4729 = vmatprep.subr.mxu0 %v4962_v7 }
 0xafe   :  { %4736 = vmatprep.mubr.msk.f32.mxu1 %vm4965_vm1, %v4962_v7 }
 0xaff   :  { %4722 = vmatmul.mubr.msk.f32.vlgmr.msra.gmra.mxu0 %vm181_vm2, %v5474_v63  ;;  %v2538_v19 = vpop.permute.xlu0 %2537 }
 0xb00   :  { %4730 = vmatpush3.xpose.msk.msra.mxu0 %vm181_vm2, %v2538_v19  ;;  %4731 = vmatprep.mubr.msk.f32.mxu0 %vm4965_vm1, %v4962_v7 }
 0xb01   :  { %4739 = vmatprep.subr.mxu0 %v4962_v7 }
 0xb03   :  { %4732 = vmatmul.mubr.msk.f32.vlgmr.msra.gmra.mxu0 %vm181_vm2, %v5480_v1  ;;  %v2690_v20 = vpop.permute.xlu0 %2689  ;;  %v2614_v16 = vpop.permute.xlu1 %2613 }
 0xb04   :  { %4735 = vmatpush3.xpose.msk.msra.mxu1 %vm181_vm2, %v2614_v16  ;;  %4740 = vmatpush3.xpose.msk.msra.mxu0 %vm181_vm2, %v2690_v20 }
 0xb05   :  { %4741 = vmatprep.mubr.msk.f32.mxu0 %vm4965_vm1, %v4962_v7  ;;  %4744 = vmatprep.subr.mxu1 %v4962_v7 }
 0xb06   :  { %4749 = vmatprep.subr.mxu0 %v4962_v7 }
 0xb07   :  { %4737 = vmatmul.mubr.msk.f32.vlgmr.msra.gmra.mxu1 %vm181_vm2, %v5485_v4  ;;  %4742 = vmatmul.mubr.msk.f32.vlgmr.msra.gmra.mxu0 %vm181_vm2, %v5478_v0  ;;  %v2766_v17 = vpop.permute.xlu1 %2765 }
 0xb08   :  { %4745 = vmatpush3.xpose.msk.msra.mxu1 %vm181_vm2, %v2766_v17  ;;  %4746 = vmatprep.mubr.msk.f32.mxu1 %vm4965_vm1, %v4962_v7 }
 0xb09   :  { %4754 = vmatprep.subr.mxu1 %v4962_v7  ;;  %4751 = vmatprep.mubr.msk.f32.mxu0 %vm4965_vm1, %v4962_v7 }
 0xb0b   :  { %4747 = vmatmul.mubr.msk.f32.vlgmr.msra.gmra.mxu1 %vm181_vm2, %v5496_v6 }
 0xb0c   :  { %4756 = vmatprep.mubr.msk.f32.mxu1 %vm4965_vm1, %v4962_v7 }
 0xb52   :  { %v2305_v21 = vpop.f32.mrf.mxu0 }
 0xb53   :  { %v2841_v22 = vmul.f32 0.35355338, %v2305_v21 }
 0xb54   :  { %v4713_v23 = vpop.f32.mrf.mxu0 }
 0xb55   :  { %v2849_v10 = vsel %vm64_vm3, %v2841_v22, -10000.0 }
 0xb56   :  { %v2857_v24 = vsel %vm181_vm2, %v2849_v10, -inf }
 0xb57   :  { %2858 = vmax.xlane.f32.xlu0 %v2857_v24 }
 0xb5c   :  { %v2381_v25 = vpop.f32.mrf.mxu1 }
 0xb5d   :  { %v2842_v13 = vmul.f32 0.35355338, %v2381_v25 }
 0xb5e   :  { %v4718_v11 = vpop.f32.mrf.mxu1 }
 0xb5f   :  { %v2850_v15 = vsel %vm65_vm4, %v2842_v13, -10000.0 }
 0xb60   :  { %v2860_v12 = vsel %vm181_vm2, %v2850_v15, -inf }
 0xb61   :  { %2861 = vmax.xlane.f32.xlu1 %v2860_v12 }
 0xbbd   :  { %v2533_v14 = vpop.f32.mrf.mxu1 }
 0xbbe   :  { %v2844_v30 = vmul.f32 0.35355338, %v2533_v14 }
 0xbbf   :  { %v2457_v27 = vpop.f32.mrf.mxu0  ;;  %v4728_v28 = vpop.f32.mrf.mxu1 }
 0xbc0   :  { %v2843_v31 = vmul.f32 0.35355338, %v2457_v27  ;;  %v2852_v29 = vsel %vm67_vm6, %v2844_v30, -10000.0 }
 0xbc1   :  { %v4723_v32 = vpop.f32.mrf.mxu0  ;;  %v2866_v40 = vsel %vm181_vm2, %v2852_v29, -inf }
 0xbc2   :  { %v2851_v26 = vsel %vm66_vm5, %v2843_v31, -10000.0 }
 0xbc3   :  { %v2609_v5 = vpop.f32.mrf.mxu0  ;;  %v2863_v2 = vsel %vm181_vm2, %v2851_v26, -inf }
 0xbc4   :  { %v2845_v33 = vmul.f32 0.35355338, %v2609_v5  ;;  %2864 = vmax.xlane.f32.xlu0 %v2863_v2 }
 0xbc5   :  { %v4733_v34 = vpop.f32.mrf.mxu0 }
 0xbc6   :  { %v2853_v35 = vsel %vm68_vm7, %v2845_v33, -10000.0 }
 0xbc7   :  { %v2685_v36 = vpop.f32.mrf.mxu1  ;;  %v2761_v37 = vpop.f32.mrf.mxu0  ;;  %v2869_v39 = vsel %vm181_vm2, %v2853_v35, -inf }
 0xbc8   :  { %v2846_v38 = vmul.f32 0.35355338, %v2685_v36  ;;  %v2847_v43 = vmul.f32 0.35355338, %v2761_v37  ;;  %2870 = vmax.xlane.f32.xlu1 %v2869_v39  ;;  %2867 = vmax.xlane.f32.xlu0 %v2866_v40 }
 0xbc9   :  { %v4738_v45 = vpop.f32.mrf.mxu1  ;;  %v4743_v46 = vpop.f32.mrf.mxu0 }
 0xbca   :  { %v2855_v41 = vsel %vm70_vm9, %v2847_v43, -10000.0  ;;  %v2854_v47 = vsel %vm69_vm8, %v2846_v38, -10000.0 }
 0xbcb   :  { %v2837_v42 = vpop.f32.mrf.mxu1  ;;  %v2875_v44 = vsel %vm181_vm2, %v2855_v41, -inf  ;;  %v2872_v48 = vsel %vm181_vm2, %v2854_v47, -inf }
 0xbcc   :  { %v2848_v49 = vmul.f32 0.35355338, %v2837_v42  ;;  %2876 = vmax.xlane.f32.xlu1 %v2875_v44  ;;  %2873 = vmax.xlane.f32.xlu0 %v2872_v48 }
 0xbcd   :  { %v4748_v52 = vpop.f32.mrf.mxu1 }
 0xbce   :  { %v2856_v53 = vsel %vm71_vm10, %v2848_v49, -10000.0 }
 0xbcf   :  { %v2878_v56 = vsel %vm181_vm2, %v2856_v53, -inf }
 0xbd0   :  { %2879 = vmax.xlane.f32.xlu0 %v2878_v56 }
 0xbdd   :  { %2945 = vrot.lane.b32.xlu1 %v5452_v60, %s4968_s1 }
 0xbe0   :  { %v2859_v62 = vpop.xlane.xlu0 %2858 }
 0xbe1   :  { %3097 = vrot.lane.b32.xlu1 %v5474_v63, %s4968_s1  ;;  %v2881_v57 = vsub.f32 %v2849_v10, %v2859_v62 }
 0xbe3   :  { %v2889_v60 = vmul.f32 1.442695, %v2881_v57 }
 0xbe5   :  { %3173 = vrot.lane.b32.xlu1 %v5470_v61, %s4968_s1 }
 0xbe6   :  { %3021 = vrot.lane.b32.xlu0 %v5450_v58, %s4968_s1 }
 0xbe9   :  { %3325 = vrot.lane.b32.xlu1 %v5485_v4, %s4968_s1 }
 0xbea   :  { %3249 = vrot.lane.b32.xlu0 %v5480_v1, %s4968_s1  ;;  %v2862_v50 = vpop.xlane.xlu1 %2861 }
 0xbeb   :  { %v2882_v51 = vsub.f32 %v2850_v15, %v2862_v50 }
 0xbed   :  { %v2891_v59 = vmul.f32 1.442695, %v2882_v51 }
 0xbef   :  { %4900 = vpow2.f32 %v2891_v59 }
 0xbf0   :  { %4902 = vpow2.f32 %v2889_v60 }
 0xbfc   :  { %v5578_v63 = vpop.eup %4900 }
 0xbfd   :  { %v2908_v61 = vsel %vm181_vm2, %v5578_v63, 0.0  ;;  %v5582_v58 = vpop.eup %4902 }
 0xbfe   :  { %v2905_v3 = vsel %vm181_vm2, %v5582_v58, 0.0 }
 0xc09   :  { %2909 = vadd.xlane.f32.xlu0 %v2908_v61 }
 0xc0d   :  { %2906 = vadd.xlane.f32.xlu1 %v2905_v3 }
 0xc4d   :  { %v2865_v1 = vpop.xlane.xlu0 %2864 }
 0xc4e   :  { %v2883_v4 = vsub.f32 %v2851_v26, %v2865_v1 }
 0xc50   :  { %v2893_v8 = vmul.f32 1.442695, %v2883_v4  ;;  %v4375_v4 = vld [vmem:[%s5747_s4 + $0x28] sm:$0xff] }
 0xc51   :  { %v2868_v9 = vpop.xlane.xlu0 %2867  ;;  %v2871_v18 = vpop.xlane.xlu1 %2870 }
 0xc52   :  { %4904 = vpow2.f32 %v2893_v8  ;;  %v2884_v19 = vsub.f32 %v2852_v29, %v2868_v9  ;;  %v2885_v20 = vsub.f32 %v2853_v35, %v2871_v18  ;;  %v4376_v8 = vld [vmem:[%s5747_s4 + $0x30] sm:$0xff]  ;;  %v4377_v9 = vld [vmem:[%s5747_s4 + $0x38] sm:$0xff] }
 0xc54   :  { %v2895_v16 = vmul.f32 1.442695, %v2884_v19  ;;  %v2897_v17 = vmul.f32 1.442695, %v2885_v20 }
 0xc55   :  { %v2874_v21 = vpop.xlane.xlu0 %2873  ;;  %v2877_v22 = vpop.xlane.xlu1 %2876 }
 0xc56   :  { %4906 = vpow2.f32 %v2895_v16  ;;  %v2886_v23 = vsub.f32 %v2854_v47, %v2874_v21  ;;  %v2887_v10 = vsub.f32 %v2855_v41, %v2877_v22 }
 0xc57   :  { %4908 = vpow2.f32 %v2897_v17 }
 0xc58   :  { %v2899_v24 = vmul.f32 1.442695, %v2886_v23  ;;  %v2901_v25 = vmul.f32 1.442695, %v2887_v10 }
 0xc59   :  { %v2880_v13 = vpop.xlane.xlu0 %2879  ;;  %v2946_v11 = vpop.permute.xlu1 %2945 }
 0xc5a   :  { %4910 = vpow2.f32 %v2899_v24  ;;  %v2888_v15 = vsub.f32 %v2856_v53, %v2880_v13  ;;  %4750 = vmatpush3.msra.mxu0 %v2946_v11 }
 0xc5b   :  { %4912 = vpow2.f32 %v2901_v25  ;;  %4759 = vmatprep.subr.mxu0 %v4962_v7 }
 0xc5c   :  { %v2903_v12 = vmul.f32 1.442695, %v2888_v15 }
 0xc5d   :  { %v3022_v14 = vpop.permute.xlu0 %3021  ;;  %v3098_v36 = vpop.permute.xlu1 %3097 }
 0xc5e   :  { %4914 = vpow2.f32 %v2903_v12  ;;  %4755 = vmatpush3.msra.mxu1 %v3022_v14 }
 0xc5f   :  { %v4905_v27 = vpop.eup %4904  ;;  %4764 = vmatprep.subr.mxu1 %v4962_v7 }
 0xc60   :  { %v2911_v28 = vsel %vm181_vm2, %v4905_v27, 0.0 }
 0xc61   :  { %2912 = vadd.xlane.f32.xlu1 %v2911_v28  ;;  %v3174_v37 = vpop.permute.xlu1 %3173  ;;  %v3250_v39 = vpop.permute.xlu0 %3249 }
 0xc63   :  { %v4907_v30 = vpop.eup %4906 }
 0xc64   :  { %v4909_v31 = vpop.eup %4908  ;;  %v2914_v32 = vsel %vm181_vm2, %v4907_v30, 0.0 }
 0xc65   :  { %2915 = vadd.xlane.f32.xlu0 %v2914_v32  ;;  %v2917_v26 = vsel %vm181_vm2, %v4909_v31, 0.0  ;;  %v3326_v40 = vpop.permute.xlu1 %3325 }
 0xc66   :  { %2918 = vadd.xlane.f32.xlu1 %v2917_v26 }
 0xc67   :  { %v4911_v5 = vpop.eup %4910 }
 0xc68   :  { %v5591_v2 = vpop.eup %4912  ;;  %v2920_v33 = vsel %vm181_vm2, %v4911_v5, 0.0 }
 0xc69   :  { %2921 = vadd.xlane.f32.xlu0 %v2920_v33  ;;  %v2923_v29 = vsel %vm181_vm2, %v5591_v2, 0.0 }
 0xc6a   :  { %2924 = vadd.xlane.f32.xlu1 %v2923_v29 }
 0xc6b   :  { %v5596_v34 = vpop.eup %4914 }
 0xc6c   :  { %v2926_v35 = vsel %vm181_vm2, %v5596_v34, 0.0 }
 0xc6d   :  { %2927 = vadd.xlane.f32.xlu0 %v2926_v35 }
 0xc7b   :  { %3477 = vrot.lane.b32.xlu1 %v5496_v6, %s4968_s1 }
 0xc83   :  { %3401 = vrot.lane.b32.xlu0 %v5478_v0, %s4968_s1 }
 0xc92   :  { %v2910_v38 = vpop.xlane.xlu0 %2909 }
 0xc93   :  { %4916 = vrcp.f32 %v2910_v38 }
 0xc96   :  { %v2907_v43 = vpop.xlane.xlu1 %2906 }
 0xc97   :  { %4918 = vrcp.f32 %v2907_v43 }
 0xca0   :  { %v4917_v45 = vpop.eup %4916 }
 0xca1   :  { %v2938_v46 = vmul.f32 %v4917_v45, %v5578_v63 }
 0xca3   :  { %4757 = vmatmul.mubr.msk.f32.vlgmr.msra.gmra.mxu1 %vm181_vm2, %v2938_v46 }
 0xca4   :  { %v4919_v41 = vpop.eup %4918  ;;  %4765 = vmatpush3.msra.mxu1 %v3174_v37  ;;  %4766 = vmatprep.mubr.msk.f32.mxu1 %vm4965_vm1, %v4962_v7 }
 0xca5   :  { %v2937_v0 = vmul.f32 %v4919_v41, %v5582_v58  ;;  %4774 = vmatprep.subr.mxu1 %v4962_v7 }
 0xca7   :  { %4752 = vmatmul.mubr.msk.f32.vlgmr.msra.gmra.mxu0 %vm181_vm2, %v2937_v0 }
 0xca8   :  { %4760 = vmatpush3.msra.mxu0 %v3098_v36  ;;  %4761 = vmatprep.mubr.msk.f32.mxu0 %vm4965_vm1, %v4962_v7 }
 0xca9   :  { %4769 = vmatprep.subr.mxu0 %v4962_v7 }
 0xcea   :  { %v2913_v6 = vpop.xlane.xlu1 %2912 }
 0xceb   :  { %4920 = vrcp.f32 %v2913_v6 }
 0xcee   :  { %v2916_v47 = vpop.xlane.xlu0 %2915 }
 0xcef   :  { %4922 = vrcp.f32 %v2916_v47  ;;  %v2919_v42 = vpop.xlane.xlu1 %2918 }
 0xcf0   :  { %4924 = vrcp.f32 %v2919_v42 }
 0xcf2   :  { %v2922_v44 = vpop.xlane.xlu0 %2921 }
 0xcf3   :  { %4926 = vrcp.f32 %v2922_v44  ;;  %v2925_v48 = vpop.xlane.xlu1 %2924 }
 0xcf4   :  { %4928 = vrcp.f32 %v2925_v48 }
 0xcf6   :  { %v2928_v49 = vpop.xlane.xlu0 %2927 }
 0xcf7   :  { %4930 = vrcp.f32 %v2928_v49  ;;  %v3478_v58 = vpop.permute.xlu1 %3477 }
 0xcf8   :  { %v4921_v52 = vpop.eup %4920 }
 0xcf9   :  { %v2939_v53 = vmul.f32 %v4921_v52, %v4905_v27 }
 0xcfa   :  { %v3402_v59 = vpop.permute.xlu0 %3401 }
 0xcfb   :  { %4762 = vmatmul.mubr.msk.f32.vlgmr.msra.gmra.mxu0 %vm181_vm2, %v2939_v53 }
 0xcfc   :  { %v4923_v56 = vpop.eup %4922  ;;  %4770 = vmatpush3.msra.mxu0 %v3250_v39  ;;  %4771 = vmatprep.mubr.msk.f32.mxu0 %vm4965_vm1, %v4962_v7 }
 0xcfd   :  { %v4925_v50 = vpop.eup %4924  ;;  %4779 = vmatprep.subr.mxu0 %v4962_v7  ;;  %v2940_v51 = vmul.f32 %v4923_v56, %v4907_v30  ;;  %v4394_v56 = vld [vmem:[%s5751_s8 + $0x30] sm:$0xff] }
 0xcfe   :  { %v2941_v62 = vmul.f32 %v4925_v50, %v4909_v31  ;;  %v4393_v50 = vld [vmem:[%s5751_s8 + $0x28] sm:$0xff] }
 0xcff   :  { %4767 = vmatmul.mubr.msk.f32.vlgmr.msra.gmra.mxu1 %vm181_vm2, %v2940_v51  ;;  %v4392_v51 = vld [vmem:[%s5751_s8 + $0x20] sm:$0xff] }
 0xd00   :  { %v4927_v57 = vpop.eup %4926  ;;  %4772 = vmatmul.mubr.msk.f32.vlgmr.msra.gmra.mxu0 %vm181_vm2, %v2941_v62  ;;  %4775 = vmatpush3.msra.mxu1 %v3326_v40  ;;  %v4407_v62 = vld [vmem:[%s5753_s10 + $0x78] sm:$0xff] }
 0xd01   :  { %v4929_v60 = vpop.eup %4928  ;;  %4780 = vmatpush3.msra.mxu0 %v3402_v59  ;;  %4776 = vmatprep.mubr.msk.f32.mxu1 %vm4965_vm1, %v4962_v7  ;;  %v2942_v63 = vmul.f32 %v4927_v57, %v4911_v5  ;;  %v4406_v57 = vld [vmem:[%s5753_s10 + $0x70] sm:$0xff]  ;;  %v4405_v59 = vld [vmem:[%s5753_s10 + $0x68] sm:$0xff] }
 0xd02   :  { %4781 = vmatprep.mubr.msk.f32.mxu0 %vm4965_vm1, %v4962_v7  ;;  %4784 = vmatprep.subr.mxu1 %v4962_v7  ;;  %v2943_v61 = vmul.f32 %v4929_v60, %v5591_v2  ;;  %v4404_v60 = vld [vmem:[%s5753_s10 + $0x60] sm:$0xff] }
 0xd03   :  { %4777 = vmatmul.mubr.msk.f32.vlgmr.msra.gmra.mxu1 %vm181_vm2, %v2942_v63  ;;  %4789 = vmatprep.subr.mxu0 %v4375_v4 }
 0xd04   :  { %v4931_v3 = vpop.eup %4930  ;;  %4782 = vmatmul.mubr.msk.f32.vlgmr.msra.gmra.mxu0 %vm181_vm2, %v2943_v61  ;;  %4785 = vmatpush3.msra.mxu1 %v3478_v58 }
 0xd05   :  { %4786 = vmatprep.mubr.msk.f32.mxu1 %vm4965_vm1, %v4962_v7  ;;  %v2944_v1 = vmul.f32 %v4931_v3, %v5596_v34  ;;  %4790 = vmatpush3.msra.mxu0 %v4375_v4  ;;  %v4374_v7 = vld [vmem:[%s5747_s4 + $0x20] sm:$0xff] }
 0xd06   :  { %4794 = vmatprep.subr.mxu1 %v4376_v8  ;;  %4799 = vmatprep.subr.mxu0 %v4377_v9  ;;  %v4387_v34 = vld [vmem:[%s5748_s5 + $0x1] ss:$0 sm:$0xff] }
 0xd07   :  { %4787 = vmatmul.mubr.msk.f32.vlgmr.msra.gmra.mxu1 %vm181_vm2, %v2944_v1 }
 0xd08   :  { %4795 = vmatpush3.msra.mxu1 %v4376_v8 }
 0xd09   :  { %4804 = vmatprep.subr.mxu1 %v4374_v7 }
 0xd63   :  { %v3093_v18 = vpop.f32.mrf.mxu1 }
 0xd65   :  { %v4758_v19 = vpop.f32.mrf.mxu1 }
 0xd67   :  { %v3017_v20 = vpop.f32.mrf.mxu0 }
 0xd69   :  { %v4753_v16 = vpop.f32.mrf.mxu0 }
 0xdbb   :  { %v3169_v17 = vpop.f32.mrf.mxu0 }
 0xdbc   :  { %4791 = vmatprep.mubr.msk.f32.mxu0 %vm181_vm2, %v3169_v17 }
 0xdbd   :  { %v4763_v21 = vpop.f32.mrf.mxu0 }
 0xdbf   :  { %v3245_v22 = vpop.f32.mrf.mxu1 }
 0xdc0   :  { %v3321_v23 = vpop.f32.mrf.mxu0  ;;  %4792 = vmatmul.mubr.msk.f32.vlgmr.msra.gmra.mxu0 %vm181_vm2, %v3245_v22 }
 0xdc1   :  { %4796 = vmatprep.mubr.msk.f32.mxu1 %vm181_vm2, %v3321_v23  ;;  %v4768_v10 = vpop.f32.mrf.mxu1  ;;  %4800 = vmatpush3.msra.mxu0 %v4377_v9  ;;  %v4403_v23 = vld [vmem:[%s5753_s10 + $0x58] sm:$0xff] }
 0xdc2   :  { %v4773_v24 = vpop.f32.mrf.mxu0  ;;  %v4402_v10 = vld [vmem:[%s5753_s10 + $0x50] sm:$0xff] }
 0xdc3   :  { %v3397_v25 = vpop.f32.mrf.mxu1  ;;  %v4401_v24 = vld [vmem:[%s5753_s10 + $0x48] sm:$0xff] }
 0xdc4   :  { %v3473_v13 = vpop.f32.mrf.mxu0  ;;  %4797 = vmatmul.mubr.msk.f32.vlgmr.msra.gmra.mxu1 %vm181_vm2, %v3397_v25  ;;  %v4400_v25 = vld [vmem:[%s5753_s10 + $0x40] sm:$0xff] }
 0xdc5   :  { %4801 = vmatprep.mubr.msk.f32.mxu0 %vm181_vm2, %v3473_v13  ;;  %v4778_v11 = vpop.f32.mrf.mxu1  ;;  %4805 = vmatpush3.msra.mxu1 %v4374_v7  ;;  %v4389_v7 = vld [vmem:[%s5749_s6 + $0x1] ss:$0 sm:$0xff] }
 0xdc6   :  { %v4783_v15 = vpop.f32.mrf.mxu0  ;;  %4806 = vmatprep.mubr.msk.f32.mxu1 %vm181_vm2, %v3017_v20  ;;  %4820 = vmatprep.subr.mxu1 %v4407_v62  ;;  %v4397_v13 = vld [vmem:[%s5752_s9 + $0x1] ss:$0 sm:$0xff] }
 0xdc7   :  { %v3549_v12 = vpop.f32.mrf.mxu1 }
 0xdc8   :  { %4802 = vmatmul.mubr.msk.f32.vlgmr.msra.gmra.mxu0 %vm181_vm2, %v3549_v12  ;;  %4807 = vmatmul.mubr.msk.f32.vlgmr.msra.gmra.mxu1 %vm181_vm2, %v3093_v18  ;;  %v4391_v18 = vld [vmem:[%s5750_s7 + $0x1] ss:$0 sm:$0xff] }
 0xdc9   :  { %v4788_v14 = vpop.f32.mrf.mxu1  ;;  %4821 = vmatpush3.msra.mxu1 %v4407_v62 }
 0xdca   :  { %4822 = vmatprep.subr.mxu1 %v4406_v57 }
 0xdcb   :  { %4823 = vmatpush3.msra.mxu1 %v4406_v57 }
 0xdcc   :  { %4824 = vmatprep.subr.mxu1 %v4405_v59 }
 0xdcd   :  { %4825 = vmatpush3.msra.mxu1 %v4405_v59 }
 0xdce   :  { %4826 = vmatprep.subr.mxu1 %v4404_v60 }
 0xdcf   :  { %4827 = vmatpush3.msra.mxu1 %v4404_v60  ;;  %v4415_v60 = vld [vmem:[%s5756_s13 + $0x1] ss:$0 sm:$0xff] }
 0xdd0   :  { %4828 = vmatprep.subr.mxu1 %v4403_v23 }
 0xdd1   :  { %4829 = vmatpush3.msra.mxu1 %v4403_v23 }
 0xdd2   :  { %4830 = vmatprep.subr.mxu1 %v4402_v10 }
 0xdd3   :  { %4831 = vmatpush3.msra.mxu1 %v4402_v10 }
 0xdd4   :  { %4832 = vmatprep.subr.mxu1 %v4401_v24 }
 0xdd5   :  { %4833 = vmatpush3.msra.mxu1 %v4401_v24 }
 0xdd6   :  { %4834 = vmatprep.subr.mxu1 %v4400_v25 }
 0xdd7   :  { %4835 = vmatpush3.msra.mxu1 %v4400_v25 }
 0xe80   :  { %v4793_v27 = vpop.f32.mrf.mxu0 }
 0xe82   :  { %v3630_v31 = vpop.f32.mrf.mxu0 }
 0xe84   :  { %v4798_v28 = vpop.f32.mrf.mxu1 }
 0xe86   :  { %v3711_v30 = vpop.f32.mrf.mxu1 }
 0xe88   :  { %v4808_v32 = vpop.f32.mrf.mxu1  ;;  %v4803_v5 = vpop.f32.mrf.mxu0 }
 0xe89   :  { %v3879_v26 = vadd.f32 %v4808_v32, %v4793_v27 }
 0xe8a   :  { %v3873_v2 = vpop.f32.mrf.mxu1  ;;  %v3792_v37 = vpop.f32.mrf.mxu0 }
 0xe8b   :  { %v3883_v33 = vadd.f32 %v4798_v28, %v3879_v26  ;;  %v3874_v29 = vadd.f32 %v3873_v2, %v3630_v31 }
 0xe8d   :  { %v3885_v35 = vadd.f32 %v4803_v5, %v3883_v33  ;;  %v3882_v36 = vadd.f32 %v3874_v29, %v3711_v30  ;;  %v4409_v30 = vld [vmem:[%s5754_s11 + $0x1] ss:$0 sm:$0xff] }
 0xe8f   :  { %v3884_v39 = vadd.f32 %v3882_v36, %v3792_v37  ;;  %v3895_v40 = vadd.f32 %v4387_v34, %v3885_v35 }
 0xe91   :  { %v3897_v38 = vadd.f32 %v3895_v40, %v5439_v55  ;;  %v3894_v43 = vadd.f32 %v4387_v34, %v3884_v39 }
 0xe93   :  { %v3901_v45 = vsel %vm83_vm0, %v3897_v38, 0.0  ;;  %v3896_v46 = vadd.f32 %v3894_v43, %v5437_v54  ;;  %v4395_v54 = vld [vmem:[%s5751_s8 + $0x38] sm:$0xff] }
 0xe94   :  { %3902 = vadd.xlane.f32.xlu1 %v3901_v45  ;;  %4809 = vmatprep.subr.mxu0 %v4395_v54 }
 0xe95   :  { %v3898_v41 = vsel %vm83_vm0, %v3896_v46, 0.0  ;;  %4810 = vmatpush3.msra.mxu0 %v4395_v54 }
 0xe96   :  { %3899 = vadd.xlane.f32.xlu0 %v3898_v41  ;;  %4811 = vmatprep.subr.mxu0 %v4394_v56 }
 0xe97   :  { %4812 = vmatpush3.msra.mxu0 %v4394_v56 }
 0xe98   :  { %4813 = vmatprep.subr.mxu0 %v4393_v50 }
 0xe99   :  { %4814 = vmatpush3.msra.mxu0 %v4393_v50  ;;  %v4413_v50 = vld [vmem:[%s5755_s12 + $0x1] ss:$0 sm:$0xff]  ;;  %s4969_s12 = smov [#allocation2]  }
 0xe9a   :  { %4815 = vmatprep.subr.mxu0 %v4392_v51  ;;  %s4285_s4 = sshll.u32 %s4969_s12, 4  ;;  %s4286_s4 = int_to_ptr.vmem [resolvable:$true] %s4285_s4 }
 0xe9b   :  { %4816 = vmatpush3.msra.mxu0 %v4392_v51  ;;  %s4940_s13 = scalar_lea.vmem %s4286_s4, 256  ;;  %p4945_p1 = scmp.lt.s32.totalorder %s4286_s4, %s4286_s4 }
 0xe9c   :  { %p4941_p0 = scmp.ne.s32.totalorder %s4286_s4, %s4940_s13  ;;  %p4946_p2 = scmp.lt.s32.totalorder %s4940_s13, %s4940_s13 }
 0xe9e   :  { %p4947_p3 = por %p4946_p2, %p4945_p1 }
 0xea0   :  { %p4948_p4 = pnand %p4947_p3, %p4941_p0 }
 0xf1d   :  { %v3903_v0 = vpop.xlane.xlu1 %3902 }
 0xf1e   :  { %v3905_v6 = vmul.f32 0.03125, %v3903_v0  ;;  %v4189_v0 = vld [vmem:[%s5757_s14 + $0x18] sm:$0xff] }
 0xf1f   :  { %v3900_v47 = vpop.xlane.xlu0 %3899  ;;  %4839 = vmatprep.subr.mxu0 %v4189_v0 }
 0xf20   :  { %v3904_v42 = vmul.f32 0.03125, %v3900_v47  ;;  %v3907_v44 = vsub.f32 %v3897_v38, %v3905_v6  ;;  %v4188_v6 = vld [vmem:[%s5757_s14 + $0x10] sm:$0xff]  ;;  %v4187_v47 = vld [vmem:[%s5757_s14 + $0x8] sm:$0xff] }
 0xf22   :  { %v3906_v48 = vsub.f32 %v3896_v46, %v3904_v42  ;;  %v3909_v53 = vmul.f32 %v3907_v44, %v3907_v44  ;;  %v4186_v42 = vld [vmem:[%s5757_s14] sm:$0xff] }
 0xf24   :  { %v3908_v49 = vmul.f32 %v3906_v48, %v3906_v48  ;;  %v3913_v55 = vsel %vm83_vm0, %v3909_v53, 0.0 }
 0xf26   :  { %v3910_v52 = vsel %vm83_vm0, %v3908_v49, 0.0 }
 0xf27   :  { %3911 = vadd.xlane.f32.xlu0 %v3910_v52 }
 0xf2b   :  { %3914 = vadd.xlane.f32.xlu0 %v3913_v55 }
 0xfb0   :  { %v3912_v63 = vpop.xlane.xlu0 %3911 }
 0xfb1   :  { %v3916_v61 = vmul.f32 0.03125, %v3912_v63 }
 0xfb3   :  { %v3918_v58 = vadd.f32 1e-12, %v3916_v61 }
 0xfb4   :  { %v3915_v3 = vpop.xlane.xlu0 %3914 }
 0xfb5   :  { %4932 = vrsqrt.f32 %v3918_v58  ;;  %v3917_v1 = vmul.f32 0.03125, %v3915_v3  ;;  %v4416_v58 = vld [vmem:[%s5758_s15] ss:$0 sm:$0xff] }
 0xfb7   :  { %v3919_v4 = vadd.f32 1e-12, %v3917_v1 }
 0xfb9   :  { %4934 = vrsqrt.f32 %v3919_v4 }
 0xfc2   :  { %v4933_v8 = vpop.eup %4932 }
 0xfc3   :  { %v3922_v9 = vmul.f32 %v4933_v8, %v3906_v48 }
 0xfc5   :  { %v3932_v19 = vmul.f32 %v4389_v7, %v3922_v9 }
 0xfc6   :  { %v4935_v20 = vpop.eup %4934 }
 0xfc7   :  { %v3923_v16 = vmul.f32 %v4935_v20, %v3907_v44  ;;  %v3942_v17 = vadd.f32 %v4391_v18, %v3932_v19 }
 0xfc9   :  { %v3933_v21 = vmul.f32 %v4389_v7, %v3923_v16  ;;  %4817 = vmatprep.mubr.msk.f32.mxu0 %vm83_vm0, %v3942_v17 }
 0xfcb   :  { %v3943_v22 = vadd.f32 %v4391_v18, %v3933_v21 }
 0xfcd   :  { %4818 = vmatmul.mubr.msk.f32.vlgmr.msra.gmra.mxu0 %vm83_vm0, %v3943_v22 }
 0xfce   :  { %4840 = vmatpush3.msra.mxu0 %v4189_v0 }
 0xfcf   :  { %4841 = vmatprep.subr.mxu0 %v4188_v6 }
 0xfd0   :  { %4842 = vmatpush3.msra.mxu0 %v4188_v6 }
 0xfd1   :  { %4843 = vmatprep.subr.mxu0 %v4187_v47 }
 0xfd2   :  { %4844 = vmatpush3.msra.mxu0 %v4187_v47 }
 0xfd3   :  { %4845 = vmatprep.subr.mxu0 %v4186_v42 }
 0xfd4   :  { %4846 = vmatpush3.msra.mxu0 %v4186_v42 }
0x108d   :  { %v4819_v11 = vpop.f32.mrf.mxu0 }
0x108e   :  { %v4035_v15 = vadd.f32 %v4819_v11, %v4397_v13 }
0x108f   :  { %v4029_v12 = vpop.f32.mrf.mxu0 }
0x1090   :  { %v4030_v14 = vadd.f32 %v4397_v13, %v4029_v12  ;;  %v4039_v28 = vmax.f32 %v4035_v15, 0.0 }
0x1092   :  { %v4038_v27 = vmax.f32 %v4030_v14, 0.0 }
0x1094   :  { %4836 = vmatprep.mubr.msk.f32.mxu1 %vm1997_vm11, %v4038_v27 }
0x1095   :  { %4837 = vmatmul.mubr.msk.f32.vlgmr.msra.gmra.mxu1 %vm1997_vm11, %v4039_v28 }
0x1155   :  { %v4838_v31 = vpop.f32.mrf.mxu1 }
0x1156   :  { %v4135_v32 = vadd.f32 %v4838_v31, %v4409_v30 }
0x1157   :  { %v4129_v26 = vpop.f32.mrf.mxu1 }
0x1158   :  { %v4130_v5 = vadd.f32 %v4409_v30, %v4129_v26  ;;  %v4139_v2 = vadd.f32 %v4135_v32, %v3943_v22 }
0x115a   :  { %v4143_v33 = vsel %vm83_vm0, %v4139_v2, 0.0  ;;  %v4138_v29 = vadd.f32 %v4130_v5, %v3942_v17 }
0x115b   :  { %4144 = vadd.xlane.f32.xlu0 %v4143_v33 }
0x115c   :  { %v4140_v34 = vsel %vm83_vm0, %v4138_v29, 0.0 }
0x115d   :  { %4141 = vadd.xlane.f32.xlu1 %v4140_v34 }
0x11e4   :  { %v4145_v35 = vpop.xlane.xlu0 %4144 }
0x11e5   :  { %v4147_v36 = vmul.f32 0.03125, %v4145_v35 }
0x11e6   :  { %v4142_v37 = vpop.xlane.xlu1 %4141 }
0x11e7   :  { %v4149_v39 = vsub.f32 %v4139_v2, %v4147_v36  ;;  %v4146_v40 = vmul.f32 0.03125, %v4142_v37 }
0x11e9   :  { %v4148_v38 = vsub.f32 %v4138_v29, %v4146_v40  ;;  %v4151_v43 = vmul.f32 %v4149_v39, %v4149_v39 }
0x11eb   :  { %v4155_v45 = vsel %vm83_vm0, %v4151_v43, 0.0  ;;  %v4150_v46 = vmul.f32 %v4148_v38, %v4148_v38 }
0x11ec   :  { %4156 = vadd.xlane.f32.xlu0 %v4155_v45 }
0x11ed   :  { %v4152_v41 = vsel %vm83_vm0, %v4150_v46, 0.0 }
0x11ee   :  { %4153 = vadd.xlane.f32.xlu1 %v4152_v41 }
0x1275   :  { %v4157_v44 = vpop.xlane.xlu0 %4156 }
0x1276   :  { %v4159_v48 = vmul.f32 0.03125, %v4157_v44 }
0x1277   :  { %v4154_v49 = vpop.xlane.xlu1 %4153 }
0x1278   :  { %v4161_v52 = vadd.f32 1e-12, %v4159_v48  ;;  %v4158_v53 = vmul.f32 0.03125, %v4154_v49 }
0x127a   :  { %4936 = vrsqrt.f32 %v4161_v52  ;;  %v4160_v55 = vadd.f32 1e-12, %v4158_v53 }
0x127c   :  { %4938 = vrsqrt.f32 %v4160_v55 }
0x1287   :  { %v4937_v54 = vpop.eup %4936 }
0x1288   :  { %v4165_v56 = vmul.f32 %v4937_v54, %v4149_v39 }
0x1289   :  { %v4939_v51 = vpop.eup %4938 }
0x128a   :  { %v4164_v62 = vmul.f32 %v4939_v51, %v4148_v38  ;;  %v4175_v57 = vmul.f32 %v4413_v50, %v4165_v56 }
0x128c   :  { %v4174_v59 = vmul.f32 %v4413_v50, %v4164_v62  ;;  %v4185_v61 = vadd.f32 %v4415_v60, %v4175_v57 }
0x128e   :  { %v4184_v63 = vadd.f32 %v4415_v60, %v4174_v59 }
0x1290   :  { %4847 = vmatprep.mubr.msk.f32.mxu0 %vm83_vm0, %v4184_v63 }
0x1291   :  { %4848 = vmatmul.mubr.msk.f32.vlgmr.msra.gmra.mxu0 %vm83_vm0, %v4185_v61 }
0x1351   :  { %v4849_v3 = vpop.f32.mrf.mxu0 }
0x1352   :  { %v4275_v1 = vadd.f32 %v4849_v3, %v4416_v58 }
0x1353   :  { %v4269_v4 = vpop.f32.mrf.mxu0 }
0x1354   :  { %4279 = vst [vmem:[#allocation2 + $0x8] sm:$0xff] %v4275_v1  ;;  %v4270_v8 = vadd.f32 %v4416_v58, %v4269_v4 }
0x1356   :  { %4278 = vst [vmem:[#allocation2] sm:$0xff] %v4270_v8 }
0x1357   :  { %4951 = shalt.err (!%p4948_p4)
}
0x1358   :  { %s4970_s17 = smov 128   ;;  %s4971_s5 = smov 8  }
0x1359   :  { %4291 = dma.vmem_to_hbm [thread:$0]  %s4286_s4, 256, %s5759_s16, [#allocation3], %s4970_s17, %s4970_s17, %s4971_s5  }
0x135a   :  { %4960 = dma.done.wait [#allocation3], 256  }
0x135b   :  { %4961 = vsyncadd [#allocation3], 4294967040 }
0x135c   :  { %4295 = vsyncpa [#allocation3], 1 }

</bundles_post_ra>
